<compile_context>
chip_gen: v5e
topology: v5e:2x2
jax: 0.10.0
libtpu: 0.0.40
codegen_flags: <defaults>
</compile_context>

<pallas_src>
import math

import jax
import jax.numpy as jnp
from jax.experimental import pallas as pl
from jax.experimental.pallas import tpu as pltpu

HIDDEN = 2 ** 7  # 128, as in the PyTorch module


def _round_up(n, m):
    return ((n + m - 1) // m) * m


def mlp_kernel(x_ref, w1_ref, b1_ref, w2_ref, b2_ref, o_ref):
    # fc1 + ReLU (f32 accumulation on the MXU, f32 elementwise)
    x = x_ref[...]
    h = jnp.dot(x, w1_ref[...], preferred_element_type=jnp.float32) + b1_ref[...]
    h = jnp.maximum(h, 0.0)
    # fc2 + sigmoid; cast h to the weight dtype for the MXU (no-op in f32 mode)
    z = jnp.dot(h.astype(w2_ref.dtype), w2_ref[...],
                preferred_element_type=jnp.float32) + b2_ref[...]
    # sigmoid via EUP exp + approx reciprocal (EUP slot; effectively free filler)
    e = jnp.exp(-z)
    o_ref[...] = pl.reciprocal(1.0 + e, approx=True).astype(o_ref.dtype)


def simple_nn_forward(x, w1, b1, w2, b2, *, tile_m=512,
                      compute_dtype=jnp.float32):
    """x: [B, input_dim] -> [B, output_dim] f32 (sigmoid probabilities)."""
    B, d_in = x.shape
    hidden = w1.shape[1]
    d_out = w2.shape[1]

    # Shrink the batch tile for tiny batches; keep it sublane-aligned (multiple of 8).
    tm = max(8, min(tile_m, _round_up(B, 8)))
    tm = _round_up(tm, 8)
    Bp = _round_up(B, tm)

    # Lane-dense output: pad d_out up to a multiple of 128 so stores are unmasked.
    d_out_p = _round_up(d_out, 128)

    xp = x if Bp == B else jnp.pad(x, ((0, Bp - B), (0, 0)))
    w2p = w2 if d_out_p == d_out else jnp.pad(w2, ((0, 0), (0, d_out_p - d_out)))
    b2p = b2 if d_out_p == d_out else jnp.pad(b2, ((0, 0), (0, d_out_p - d_out)))

    # Optional bf16 MXU inputs; biases/activations stay f32 (safe on v5e too).
    xp = xp.astype(compute_dtype)
    w1c = w1.astype(compute_dtype)
    w2c = w2p.astype(compute_dtype)
    b1c = b1.astype(jnp.float32)
    b2c = b2p.astype(jnp.float32)

    grid = (Bp // tm,)
    out = pl.pallas_call(
        mlp_kernel,
        out_shape=jax.ShapeDtypeStruct((Bp, d_out_p), jnp.float32),
        grid_spec=pltpu.PrefetchScalarGridSpec(
            num_scalar_prefetch=0,
            grid=grid,
            in_specs=[
                pl.BlockSpec((tm, d_in), lambda i: (i, 0)),       # x tile
                pl.BlockSpec((d_in, hidden), lambda i: (0, 0)),   # w1 (resident)
                pl.BlockSpec((1, hidden), lambda i: (0, 0)),      # b1
                pl.BlockSpec((hidden, d_out_p), lambda i: (0, 0)),  # w2 (padded)
                pl.BlockSpec((1, d_out_p), lambda i: (0, 0)),     # b2 (padded)
            ],
            out_specs=pl.BlockSpec((tm, d_out_p), lambda i: (i, 0)),
        ),
        compiler_params=pltpu.CompilerParams(
            dimension_semantics=("parallel",),  # megacore-shardable on v7x
        ),
    )(xp, w1c, b1c, w2c, b2c)

    # Slice away the batch and lane padding.
    return out[:B, :d_out]


def init_params(key, input_dim, output_dim):
    """Deterministic init mirroring nn.Linear default (uniform +-1/sqrt(fan_in))."""
    k1, k2, k3, k4 = jax.random.split(key, 4)
    lim1 = 1.0 / math.sqrt(input_dim)
    lim2 = 1.0 / math.sqrt(HIDDEN)
    w1 = jax.random.uniform(k1, (input_dim, HIDDEN), jnp.float32, -lim1, lim1)
    b1 = jax.random.uniform(k2, (1, HIDDEN), jnp.float32, -lim1, lim1)
    w2 = jax.random.uniform(k3, (HIDDEN, output_dim), jnp.float32, -lim2, lim2)
    b2 = jax.random.uniform(k4, (1, output_dim), jnp.float32, -lim2, lim2)
    return w1, b1, w2, b2


if __name__ == "__main__":
    key = jax.random.PRNGKey(0)
    k_x, k_p = jax.random.split(key)

    # Non-multiple batch exercises the pad/cdiv path; tile_m=512 -> grid of 2 steps.
    batch, input_dim, output_dim = 1000, 32, 16
    x = jax.random.normal(k_x, (batch, input_dim), jnp.float32)
    w1, b1, w2, b2 = init_params(k_p, input_dim, output_dim)

    out = simple_nn_forward(x, w1, b1, w2, b2, tile_m=512)
    out = jax.block_until_ready(out)

    # Pure-JAX reference check (slightly loose tolerance: approx EUP reciprocal).
    ref_h = jnp.maximum(x @ w1 + b1, 0.0)
    ref = jax.nn.sigmoid(ref_h @ w2 + b2)
    assert out.shape == (batch, output_dim)
    assert jnp.allclose(out, ref, atol=2e-3, rtol=0.0), float(jnp.max(jnp.abs(out - ref)))

    print("KERNEL_OK")
</pallas_src>

<mosaic_0001>
module attributes {stable_mosaic.version = 11 : i64} {
  func.func @mlp_kernel(%arg0: i32, %arg1: memref<512x32xf32, #tpu.memory_space<vmem>>, %arg2: memref<32x128xf32, #tpu.memory_space<vmem>>, %arg3: memref<1x128xf32, #tpu.memory_space<vmem>>, %arg4: memref<128x128xf32, #tpu.memory_space<vmem>>, %arg5: memref<1x128xf32, #tpu.memory_space<vmem>>, %arg6: memref<512x128xf32, #tpu.memory_space<vmem>>) attributes {dimension_semantics = [#tpu.dimension_semantics<parallel>], iteration_bounds = array<i64: 2>, scalar_prefetch = 0 : i64, scratch_operands = 0 : i64, tpu.core_type = #tpu.core_type<tc>, window_params = [{transform_indices = @transform_0, window_bounds = array<i64: 512, 32>}, {pipeline_mode = #tpu.pipeline_mode<synchronous>, transform_indices = @transform_1, window_bounds = array<i64: 32, 128>}, {pipeline_mode = #tpu.pipeline_mode<synchronous>, transform_indices = @transform_2, window_bounds = array<i64: 1, 128>}, {pipeline_mode = #tpu.pipeline_mode<synchronous>, transform_indices = @transform_3, window_bounds = array<i64: 128, 128>}, {pipeline_mode = #tpu.pipeline_mode<synchronous>, transform_indices = @transform_4, window_bounds = array<i64: 1, 128>}, {transform_indices = @transform_5, window_bounds = array<i64: 512, 128>}]} {
    %c0 = arith.constant 0 : index
    %c0_0 = arith.constant 0 : index
    %0 = vector.load %arg1[%c0, %c0_0] : memref<512x32xf32, #tpu.memory_space<vmem>>, vector<512x32xf32>
    %c0_1 = arith.constant 0 : index
    %c0_2 = arith.constant 0 : index
    %1 = vector.load %arg2[%c0_1, %c0_2] : memref<32x128xf32, #tpu.memory_space<vmem>>, vector<32x128xf32>
    %cst = arith.constant dense<0.000000e+00> : vector<512x128xf32>
    %2 = tpu.matmul %0, %1, %cst {dimension_numbers = #tpu.dot_dimension_numbers<[1], [0], [0], [1], [0, 0, 1, 1], [], []>} : vector<512x32xf32>, vector<32x128xf32>, vector<512x128xf32> -> vector<512x128xf32>
    %c0_3 = arith.constant 0 : index
    %c0_4 = arith.constant 0 : index
    %3 = vector.load %arg3[%c0_3, %c0_4] : memref<1x128xf32, #tpu.memory_space<vmem>>, vector<1x128xf32>
    %4 = vector.broadcast %3 : vector<1x128xf32> to vector<512x128xf32>
    %5 = arith.addf %2, %4 : vector<512x128xf32>
    %cst_5 = arith.constant 0.000000e+00 : f32
    %6 = vector.broadcast %cst_5 : f32 to vector<512x128xf32>
    %7 = arith.maximumf %5, %6 : vector<512x128xf32>
    %c0_6 = arith.constant 0 : index
    %c0_7 = arith.constant 0 : index
    %8 = vector.load %arg4[%c0_6, %c0_7] : memref<128x128xf32, #tpu.memory_space<vmem>>, vector<128x128xf32>
    %cst_8 = arith.constant dense<0.000000e+00> : vector<512x128xf32>
    %9 = tpu.matmul %7, %8, %cst_8 {dimension_numbers = #tpu.dot_dimension_numbers<[1], [0], [0], [1], [0, 0, 1, 1], [], []>} : vector<512x128xf32>, vector<128x128xf32>, vector<512x128xf32> -> vector<512x128xf32>
    %c0_9 = arith.constant 0 : index
    %c0_10 = arith.constant 0 : index
    %10 = vector.load %arg5[%c0_9, %c0_10] : memref<1x128xf32, #tpu.memory_space<vmem>>, vector<1x128xf32>
    %11 = vector.broadcast %10 : vector<1x128xf32> to vector<512x128xf32>
    %12 = arith.addf %9, %11 : vector<512x128xf32>
    %cst_11 = arith.constant 0.000000e+00 : f32
    %13 = vector.broadcast %cst_11 : f32 to vector<512x128xf32>
    %14 = arith.subf %13, %12 : vector<512x128xf32>
    %15 = math.exp %14 : vector<512x128xf32>
    %cst_12 = arith.constant 1.000000e+00 : f32
    %16 = vector.broadcast %cst_12 : f32 to vector<512x128xf32>
    %17 = arith.addf %16, %15 : vector<512x128xf32>
    %18 = tpu.reciprocal %17 {approx = true} : vector<512x128xf32> -> vector<512x128xf32>
    %c0_13 = arith.constant 0 : index
    %c0_14 = arith.constant 0 : index
    %19 = vector.load %arg6[%c0_13, %c0_14] : memref<512x128xf32, #tpu.memory_space<vmem>>, vector<512x128xf32>
    tpu.vector_store %arg6[%c0_13, %c0_14], %18 {strides = array<i32>} : memref<512x128xf32, #tpu.memory_space<vmem>>, vector<512x128xf32>,
    return
  }
  func.func @transform_0(%arg0: i32) -> (i32, i32) {
    %c0_i32 = arith.constant 0 : i32
    %c0_i32_0 = arith.constant 0 : i32
    return %arg0, %c0_i32 : i32, i32
  }
  func.func @transform_1(%arg0: i32) -> (i32, i32) {
    %c0_i32 = arith.constant 0 : i32
    %c0_i32_0 = arith.constant 0 : i32
    %c0_i32_1 = arith.constant 0 : i32
    return %c0_i32, %c0_i32_0 : i32, i32
  }
  func.func @transform_2(%arg0: i32) -> (i32, i32) {
    %c0_i32 = arith.constant 0 : i32
    %c0_i32_0 = arith.constant 0 : i32
    %c0_i32_1 = arith.constant 0 : i32
    return %c0_i32, %c0_i32_0 : i32, i32
  }
  func.func @transform_3(%arg0: i32) -> (i32, i32) {
    %c0_i32 = arith.constant 0 : i32
    %c0_i32_0 = arith.constant 0 : i32
    %c0_i32_1 = arith.constant 0 : i32
    return %c0_i32, %c0_i32_0 : i32, i32
  }
  func.func @transform_4(%arg0: i32) -> (i32, i32) {
    %c0_i32 = arith.constant 0 : i32
    %c0_i32_0 = arith.constant 0 : i32
    %c0_i32_1 = arith.constant 0 : i32
    return %c0_i32, %c0_i32_0 : i32, i32
  }
  func.func @transform_5(%arg0: i32) -> (i32, i32) {
    %c0_i32 = arith.constant 0 : i32
    %c0_i32_0 = arith.constant 0 : i32
    return %arg0, %c0_i32 : i32, i32
  }
}

</mosaic_0001>

<bundles_post_ra>
// kernel: tpu_custom_call.1
= control target key start
LH: loop header
LB: loop body
LE: loop exit
PB: predicated region body
PF: predicated region fallthrough
CT: control target
= control target key end

     0   :  { %10 = vsyncpa [#allocation3], 0  ;;  %s2542_s0 = inlined_call_operand.vmem [shape: f32[1024,32], index: 0, kind: input, shape index: {}]   ;;  %s2543_s1 = inlined_call_operand.vmem [shape: f32[32,128], index: 1, kind: input, shape index: {}]   ;;  %s2544_s2 = inlined_call_operand.vmem [shape: f32[1,128], index: 2, kind: input, shape index: {}]   ;;  %s2545_s3 = inlined_call_operand.vmem [shape: f32[128,128], index: 3, kind: input, shape index: {}]   ;;  %s2546_s4 = inlined_call_operand.vmem [shape: f32[1,128], index: 4, kind: input, shape index: {}]   ;;  %s2547_s5 = inlined_call_operand.hbm [shape: f32[1024,128], index: 5, kind: output, shape index: {}]  }
   0x1   :  { %12 = vsyncpa [#allocation3 + $0x1], 0  ;;  %s1965_s18 = smov 0   ;;  %s1967_s19 = smov 0  }
   0x2   :  { %s1969_s20 = smov 0   ;;  %s1971_s21 = smov 0  }
   0x3 LB: > { %s1986_s22 = sadd.s32 4294967295, %s1931_s21   ;;  %s1455_s23 = sadd.s32 4294967294, %s1931_s21   ;;  %s1931_s21 = sphi %s1971_s21, %s2553_s21   ;;  %s1927_s20 = sphi %s1969_s20, %s2552_s20   ;;  %s1923_s19 = sphi %s1967_s19, %s2551_s19   ;;  %s1919_s18 = sphi %s1965_s18, %s2550_s18  }
   0x4   : > { %s1990_s24 = sadd.s32 1, %s1931_s21   ;;  %s135_s25 = sadd.s32 1, %s1927_s20 }
   0x5   : > { %s132_s26 = ssub.s32 %s1931_s21, %s1990_s24  ;;  %p145_p0 = scmp.ne.s32.totalorder %s1927_s20, %s1923_s19 }
   0x6   : > { %p133_p1 = scmp.eq.s32.totalorder %s132_s26, 0  ;;  %p146_p2 = scmp.eq.s32.totalorder %s1986_s22, 1 }
   0x7   : > { %p151_p3 = scmp.ne.s32.totalorder %s1923_s19, %s1919_s18  ;;  %p152_p4 = scmp.eq.s32.totalorder %s1455_s23, 1 }
   0x8   : > { %s2001_s27 = scalar_select %p133_p1, %s1927_s20, %s135_s25  }
   0x9   : > { %p2003_p5 = por %p146_p2, %p145_p0  ;;  %p2007_p6 = por %p152_p4, %p151_p3 }
   0xa   : > { %p1458_p7 = scmp.ge.s32.totalorder %s1931_s21, 1  ;;  %p191_p8 = scmp.lt.s32.totalorder %s1931_s21, 3 }
   0xc   : > { %p192_p9 = pnand %p1458_p7, %p191_p8 }
   0xd   : > { %s1460_s9 = sshll.u32 (!%p192_p9), %s1986_s22, 6  ;;  %s216_s8 = sand.u32 (!%p192_p9), 1, %s1923_s19  }
   0xe   : > { %195 = sbr.rel (%p192_p9) target bundleno = 803 (0x323), region = 40  ;;  %p220_p10 = scmp.lt.s32.totalorder (!%p192_p9), %s1460_s9, 127 }
   0xf   : > { %s1378_s30 = scalar_lea.sflag (!%p192_p9), [#allocation3], %s216_s8 }
  0x13   : > { %v293_v0 = vld [vmem:[%s2543_s1 + $0x18] sm:$0xff]  ;;  %v292_v1 = vld [vmem:[%s2543_s1 + $0x10] sm:$0xff]  ;;  %v291_v2 = vld [vmem:[%s2543_s1 + $0x8] sm:$0xff]  ;;  %s2555_s9 = smov (!%p220_p10, %s1460_s9), 127  ;;  %vm298_vm0 = vcmask 261120  }
  0x14   : > { %503 = vmatpush.msra.mxu0 %v293_v0  ;;  %1532 = vmatpush.msra.mxu3 %v293_v0  ;;  %v290_v3 = vld [vmem:[%s2543_s1] sm:$0xff]  ;;  %s1461_s14 = sshll.u32 %s2555_s9, 3  ;;  %v779_v13 = vld [vmem:[%s2545_s3 + $0x78] sm:$0xff]  ;;  %v778_v14 = vld [vmem:[%s2545_s3 + $0x70] sm:$0xff]  ;;  %s1459_s9 = sshll.u32 %s216_s8, 9 }
  0x15   : > { %s2029_s17 = scalar_lea.vmem %s2542_s0, %s1461_s14  ;;  %784 = vmatpush.msra.mxu1 %v779_v13  ;;  %1536 = vmatpush.msra.mxu2 %v779_v13  ;;  %v777_v15 = vld [vmem:[%s2545_s3 + $0x68] sm:$0xff]  ;;  %v776_v17 = vld [vmem:[%s2545_s3 + $0x60] sm:$0xff]  ;;  %v775_v18 = vld [vmem:[%s2545_s3 + $0x58] sm:$0xff]  ;;  %s2198_s10 = scalar_lea.vmem [#allocation2], %s1459_s9 }
  0x16   : > { %504 = vmatpush.msra.mxu0 %v292_v1  ;;  %1533 = vmatpush.msra.mxu3 %v292_v1  ;;  %v226_v4 = vld [vmem:[%s2029_s17] sm:$0xff]  ;;  %v227_v5 = vld [vmem:[%s2029_s17 + $0x8] sm:$0xff]  ;;  %v228_v6 = vld [vmem:[%s2029_s17 + $0x10] sm:$0xff]  ;;  %s1531_s14 = sshll.u32 %s1986_s22, 9  ;;  %s1390_s25 = sshll.u32 %s2198_s10, 4  ;;  %s1391_s25 = int_to_ptr.vmem [resolvable:$true] %s1390_s25 }
  0x17   : > { %v229_v7 = vld [vmem:[%s2029_s17 + $0x18] sm:$0xff]  ;;  %v230_v8 = vld [vmem:[%s2029_s17 + $0x20] sm:$0xff]  ;;  %v231_v9 = vld [vmem:[%s2029_s17 + $0x28] sm:$0xff]  ;;  %785 = vmatpush.msra.mxu1 %v778_v14  ;;  %1538 = vmatpush.msra.mxu2 %v778_v14  ;;  %s1389_s23 = scalar_lea.hbm %s2547_s5, %s1531_s14 }
  0x18   : > { %505 = vmatpush.msra.mxu0 %v291_v2  ;;  %1534 = vmatpush.msra.mxu3 %v291_v2  ;;  %v232_v10 = vld [vmem:[%s2029_s17 + $0x30] sm:$0xff]  ;;  %v233_v11 = vld [vmem:[%s2029_s17 + $0x38] sm:$0xff]  ;;  %v234_v12 = vld [vmem:[%s2029_s17 + $0x40] sm:$0xff]  ;;  %s1392_s26 = sshll.u32 %s1389_s23, 4  ;;  %s1393_s26 = int_to_ptr.hbm [resolvable:$true] %s1392_s26 }
  0x19   : > { %v235_v16 = vld [vmem:[%s2029_s17 + $0x48] sm:$0xff]  ;;  %786 = vmatpush.msra.mxu1 %v777_v15  ;;  %1540 = vmatpush.msra.mxu2 %v777_v15  ;;  %v774_v19 = vld [vmem:[%s2545_s3 + $0x50] sm:$0xff]  ;;  %v772_v22 = vld [vmem:[%s2545_s3 + $0x40] sm:$0xff]  ;;  %s1883_s6 = sshra.s32 %s1393_s26, 4  ;;  %s1884_s6 = int_to_ptr.hbm [resolvable:$true] %s1883_s6 }
  0x1a   : > { %506 = vmatpush.msra.mxu0 %v290_v3  ;;  %1535 = vmatpush.msra.mxu3 %v290_v3  ;;  %v773_v20 = vld [vmem:[%s2545_s3 + $0x48] sm:$0xff]  ;;  %v236_v21 = vld [vmem:[%s2029_s17 + $0x50] sm:$0xff]  ;;  %v771_v23 = vld [vmem:[%s2545_s3 + $0x38] sm:$0xff]  ;;  %s1885_s22 = scalar_lea.hbm %s1884_s6, 512  ;;  %p1890_p0 = scmp.lt.s32.totalorder %s1884_s6, %s2547_s5 }
  0x1b   : > { %1462 = vmatmul.msk.f32.vlgmr.msra.gmra.mxu0 %vm298_vm0, %v226_v4  ;;  %787 = vmatpush.msra.mxu1 %v776_v17  ;;  %v770_v24 = vld [vmem:[%s2545_s3 + $0x30] sm:$0xff]  ;;  %v769_v25 = vld [vmem:[%s2545_s3 + $0x28] sm:$0xff]  ;;  %v237_v26 = vld [vmem:[%s2029_s17 + $0x58] sm:$0xff]  ;;  %p1886_p11 = scmp.ne.s32.totalorder %s1884_s6, %s1885_s22 }
  0x1c   : > { %1537 = vmatpush.msrb.mxu3 %v779_v13  ;;  %1542 = vmatpush.msra.mxu2 %v776_v17  ;;  %v768_v27 = vld [vmem:[%s2545_s3 + $0x20] sm:$0xff]  ;;  %v767_v28 = vld [vmem:[%s2545_s3 + $0x18] sm:$0xff]  ;;  %v766_v29 = vld [vmem:[%s2545_s3 + $0x10] sm:$0xff] }
  0x1d   : > { %788 = vmatpush.msra.mxu1 %v775_v18  ;;  %v238_v30 = vld [vmem:[%s2029_s17 + $0x60] sm:$0xff]  ;;  %v765_v31 = vld [vmem:[%s2545_s3 + $0x8] sm:$0xff]  ;;  %v240_v34 = vld [vmem:[%s2029_s17 + $0x70] sm:$0xff]  ;;  %p1887_p12 = pnand %p1886_p11, %p2003_p5 }
  0x1e   : > { %1539 = vmatpush.msrb.mxu3 %v778_v14  ;;  %1544 = vmatpush.msra.mxu2 %v775_v18  ;;  %v764_v32 = vld [vmem:[%s2545_s3] sm:$0xff]  ;;  %v239_v33 = vld [vmem:[%s2029_s17 + $0x68] sm:$0xff]  ;;  %v241_v35 = vld [vmem:[%s2029_s17 + $0x78] sm:$0xff] }
  0x1f   : > { %789 = vmatpush.msra.mxu1 %v774_v19  ;;  %v2114_v36 = vld [vmem:[%s2544_s2] ss:$0 sm:$0xff]  ;;  %v243_v42 = vld [vmem:[%s2029_s17 + $0x88] sm:$0xff]  ;;  %v244_v46 = vld [vmem:[%s2029_s17 + $0x90] sm:$0xff]  ;;  %p1888_p13 = pneg %p1887_p12 }
  0x20   : > { %1541 = vmatpush.msrb.mxu3 %v777_v15  ;;  %1546 = vmatpush.msra.mxu2 %v774_v19  ;;  %v242_v38 = vld [vmem:[%s2029_s17 + $0x80] sm:$0xff]  ;;  %v245_v50 = vld [vmem:[%s2029_s17 + $0x98] sm:$0xff]  ;;  %v247_v58 = vld [vmem:[%s2029_s17 + $0xa8] sm:$0xff] }
  0x21   : > { %790 = vmatpush.msra.mxu1 %v773_v20  ;;  %v246_v54 = vld [vmem:[%s2029_s17 + $0xa0] sm:$0xff]  ;;  %v248_v62 = vld [vmem:[%s2029_s17 + $0xb0] sm:$0xff]  ;;  %v249_v2 = vld [vmem:[%s2029_s17 + $0xb8] sm:$0xff] }
  0x22   : > { %1543 = vmatpush.msrb.mxu3 %v776_v17  ;;  %1548 = vmatpush.msra.mxu2 %v773_v20  ;;  %v252_v14 = vld [vmem:[%s2029_s17 + $0xd0] sm:$0xff] }
  0x23   : > { %1463 = vmatmul.msk.f32.gmra.mxu0 %vm298_vm0, %v227_v5  ;;  %791 = vmatpush.msra.mxu1 %v772_v22 }
  0x24   : > { %1545 = vmatpush.msrb.mxu3 %v775_v18  ;;  %1550 = vmatpush.msra.mxu2 %v772_v22  ;;  %v253_v18 = vld [vmem:[%s2029_s17 + $0xd8] sm:$0xff] }
  0x25   : > { %792 = vmatpush.msra.mxu1 %v771_v23 }
  0x26   : > { %1547 = vmatpush.msrb.mxu3 %v774_v19  ;;  %1552 = vmatpush.msra.mxu2 %v771_v23 }
  0x27   : > { %793 = vmatpush.msra.mxu1 %v770_v24 }
  0x28   : > { %1549 = vmatpush.msrb.mxu3 %v773_v20  ;;  %1554 = vmatpush.msra.mxu2 %v770_v24 }
  0x29   : > { %794 = vmatpush.msra.mxu1 %v769_v25 }
  0x2a   : > { %1551 = vmatpush.msrb.mxu3 %v772_v22  ;;  %1556 = vmatpush.msra.mxu2 %v769_v25 }
  0x2b   : > { %1464 = vmatmul.msk.f32.gmra.mxu0 %vm298_vm0, %v228_v6  ;;  %795 = vmatpush.msra.mxu1 %v768_v27  ;;  %v250_v6 = vld [vmem:[%s2029_s17 + $0xc0] sm:$0xff] }
  0x2c   : > { %1553 = vmatpush.msrb.mxu3 %v771_v23  ;;  %1558 = vmatpush.msra.mxu2 %v768_v27  ;;  %v254_v23 = vld [vmem:[%s2029_s17 + $0xe0] sm:$0xff] }
  0x2d   : > { %796 = vmatpush.msra.mxu1 %v767_v28 }
  0x2e   : > { %1555 = vmatpush.msrb.mxu3 %v770_v24  ;;  %1560 = vmatpush.msra.mxu2 %v767_v28 }
  0x2f   : > { %797 = vmatpush.msra.mxu1 %v766_v29 }
  0x30   : > { %1557 = vmatpush.msrb.mxu3 %v769_v25  ;;  %1562 = vmatpush.msra.mxu2 %v766_v29 }
  0x31   : > { %798 = vmatpush.msra.mxu1 %v765_v31 }
  0x32   : > { %1559 = vmatpush.msrb.mxu3 %v768_v27  ;;  %1564 = vmatpush.msra.mxu2 %v765_v31 }
  0x33   : > { %1465 = vmatmul.msk.f32.gmra.mxu0 %vm298_vm0, %v229_v7  ;;  %799 = vmatpush.msra.mxu1 %v764_v32 }
  0x34   : > { %1561 = vmatpush.msrb.mxu3 %v767_v28  ;;  %1566 = vmatpush.msra.mxu2 %v764_v32  ;;  %v255_v28 = vld [vmem:[%s2029_s17 + $0xe8] sm:$0xff] }
  0x36   : > { %1563 = vmatpush.msrb.mxu3 %v766_v29 }
  0x38   : > { %1565 = vmatpush.msrb.mxu3 %v765_v31  ;;  %v262_v31 = vld [vmem:[%s2029_s17 + $0x120] sm:$0xff] }
  0x3a   : > { %1567 = vmatpush.msrb.mxu3 %v764_v32 }
  0x3b   : > { %1466 = vmatmul.msk.f32.gmra.mxu0 %vm298_vm0, %v230_v8 }
  0x43   : > { %1467 = vmatmul.msk.f32.gmra.mxu0 %vm298_vm0, %v231_v9 }
  0x4b   : > { %1468 = vmatmul.msk.f32.gmra.mxu0 %vm298_vm0, %v232_v10  ;;  %v251_v10 = vld [vmem:[%s2029_s17 + $0xc8] sm:$0xff] }
  0x53   : > { %1469 = vmatmul.msk.f32.gmra.mxu0 %vm298_vm0, %v233_v11 }
  0x5b   : > { %1470 = vmatmul.msk.f32.gmra.mxu0 %vm298_vm0, %v234_v12 }
  0x63   : > { %1471 = vmatmul.msk.f32.gmra.mxu0 %vm298_vm0, %v235_v16 }
  0x6b   : > { %1472 = vmatmul.msk.f32.gmra.mxu0 %vm298_vm0, %v236_v21  ;;  %v260_v21 = vld [vmem:[%s2029_s17 + $0x110] sm:$0xff] }
  0x6c   : > { %1496 = vmatmul.msk.f32.vlgmr.msra.gmra.mxu3 %vm298_vm0, %v260_v21 }
  0x73   : > { %1473 = vmatmul.msk.f32.gmra.mxu0 %vm298_vm0, %v237_v26  ;;  %v261_v26 = vld [vmem:[%s2029_s17 + $0x118] sm:$0xff] }
  0x74   : > { %1497 = vmatmul.msk.f32.gmra.mxu3 %vm298_vm0, %v261_v26 }
  0x7b   : > { %1474 = vmatmul.msk.f32.gmra.mxu0 %vm298_vm0, %v238_v30 }
  0x7c   : > { %1498 = vmatmul.msk.f32.gmra.mxu3 %vm298_vm0, %v262_v31 }
  0x83   : > { %1475 = vmatmul.msk.f32.gmra.mxu0 %vm298_vm0, %v239_v33  ;;  %v256_v33 = vld [vmem:[%s2029_s17 + $0xf0] sm:$0xff] }
  0x8b   : > { %1476 = vmatmul.msk.f32.gmra.mxu0 %vm298_vm0, %v240_v34 }
  0x93   : > { %1477 = vmatmul.msk.f32.gmra.mxu0 %vm298_vm0, %v241_v35 }
  0x98   : > { %v508_v37 = vpop.f32.mrf.mxu0 }
  0x99   : > { %v509_v39 = vadd.f32 %v2114_v36, %v508_v37  ;;  %v263_v37 = vld [vmem:[%s2029_s17 + $0x128] sm:$0xff] }
  0x9a   : > { %1499 = vmatmul.msk.f32.gmra.mxu3 %vm298_vm0, %v263_v37 }
  0x9b   : > { %1478 = vmatmul.msk.f32.gmra.mxu0 %vm298_vm0, %v242_v38  ;;  %v700_v40 = vmax.f32 %v509_v39, 0.0  ;;  %v257_v39 = vld [vmem:[%s2029_s17 + $0xf8] sm:$0xff] }
  0x9d   : > { %800 = vmatmul.f32.vlgmr.msra.gmra.mxu1 %v700_v40 }
  0xa0   : > { %v511_v41 = vpop.f32.mrf.mxu0 }
  0xa1   : > { %v512_v43 = vadd.f32 %v2114_v36, %v511_v41 }
  0xa3   : > { %1479 = vmatmul.msk.f32.gmra.mxu0 %vm298_vm0, %v243_v42  ;;  %v701_v44 = vmax.f32 %v512_v43, 0.0  ;;  %v264_v42 = vld [vmem:[%s2029_s17 + $0x130] sm:$0xff]  ;;  %v2177_v43 = vld [vmem:[%s2546_s4] ss:$0 sm:$0xff] }
  0xa4   : > { %1500 = vmatmul.msk.f32.gmra.mxu3 %vm298_vm0, %v264_v42 }
  0xa5   : > { %803 = vmatmul.f32.gmra.mxu1 %v701_v44 }
  0xa8   : > { %v514_v45 = vpop.f32.mrf.mxu0 }
  0xa9   : > { %v515_v47 = vadd.f32 %v2114_v36, %v514_v45  ;;  %v258_v45 = vld [vmem:[%s2029_s17 + $0x100] sm:$0xff] }
  0xab   : > { %1480 = vmatmul.msk.f32.gmra.mxu0 %vm298_vm0, %v244_v46  ;;  %v702_v48 = vmax.f32 %v515_v47, 0.0 }
  0xad   : > { %806 = vmatmul.f32.gmra.mxu1 %v702_v48 }
  0xb0   : > { %v517_v49 = vpop.f32.mrf.mxu0 }
  0xb1   : > { %v518_v51 = vadd.f32 %v2114_v36, %v517_v49 }
  0xb3   : > { %1481 = vmatmul.msk.f32.gmra.mxu0 %vm298_vm0, %v245_v50  ;;  %v703_v52 = vmax.f32 %v518_v51, 0.0  ;;  %v265_v50 = vld [vmem:[%s2029_s17 + $0x138] sm:$0xff] }
  0xb4   : > { %1501 = vmatmul.msk.f32.gmra.mxu3 %vm298_vm0, %v265_v50 }
  0xb5   : > { %809 = vmatmul.f32.gmra.mxu1 %v703_v52 }
  0xb8   : > { %v520_v53 = vpop.f32.mrf.mxu0 }
  0xb9   : > { %v521_v55 = vadd.f32 %v2114_v36, %v520_v53 }
  0xbb   : > { %1482 = vmatmul.msk.f32.gmra.mxu0 %vm298_vm0, %v246_v54  ;;  %v704_v56 = vmax.f32 %v521_v55, 0.0  ;;  %v259_v54 = vld [vmem:[%s2029_s17 + $0x108] sm:$0xff] }
  0xbd   : > { %812 = vmatmul.f32.gmra.mxu1 %v704_v56 }
  0xc0   : > { %v523_v57 = vpop.f32.mrf.mxu0 }
  0xc1   : > { %v524_v59 = vadd.f32 %v2114_v36, %v523_v57 }
  0xc3   : > { %1483 = vmatmul.msk.f32.gmra.mxu0 %vm298_vm0, %v247_v58  ;;  %v705_v60 = vmax.f32 %v524_v59, 0.0  ;;  %v266_v59 = vld [vmem:[%s2029_s17 + $0x140] sm:$0xff] }
  0xc4   : > { %1502 = vmatmul.msk.f32.gmra.mxu3 %vm298_vm0, %v266_v59 }
  0xc5   : > { %815 = vmatmul.f32.gmra.mxu1 %v705_v60 }
  0xc8   : > { %v526_v61 = vpop.f32.mrf.mxu0 }
  0xc9   : > { %v527_v63 = vadd.f32 %v2114_v36, %v526_v61 }
  0xcb   : > { %1484 = vmatmul.msk.f32.gmra.mxu0 %vm298_vm0, %v248_v62  ;;  %v706_v0 = vmax.f32 %v527_v63, 0.0 }
  0xcd   : > { %818 = vmatmul.f32.gmra.mxu1 %v706_v0 }
  0xd0   : > { %v529_v1 = vpop.f32.mrf.mxu0 }
  0xd1   : > { %v530_v3 = vadd.f32 %v2114_v36, %v529_v1 }
  0xd3   : > { %1485 = vmatmul.msk.f32.gmra.mxu0 %vm298_vm0, %v249_v2  ;;  %v707_v4 = vmax.f32 %v530_v3, 0.0 }
  0xd5   : > { %821 = vmatmul.f32.gmra.mxu1 %v707_v4 }
  0xd8   : > { %v532_v5 = vpop.f32.mrf.mxu0 }
  0xd9   : > { %v533_v7 = vadd.f32 %v2114_v36, %v532_v5  ;;  %v267_v5 = vld [vmem:[%s2029_s17 + $0x148] sm:$0xff] }
  0xda   : > { %1503 = vmatmul.msk.f32.gmra.mxu3 %vm298_vm0, %v267_v5 }
  0xdb   : > { %1486 = vmatmul.msk.f32.gmra.mxu0 %vm298_vm0, %v250_v6  ;;  %v708_v8 = vmax.f32 %v533_v7, 0.0 }
  0xdd   : > { %824 = vmatmul.f32.gmra.mxu1 %v708_v8 }
  0xe0   : > { %v535_v9 = vpop.f32.mrf.mxu0 }
  0xe1   : > { %v536_v11 = vadd.f32 %v2114_v36, %v535_v9 }
  0xe3   : > { %1487 = vmatmul.msk.f32.gmra.mxu0 %vm298_vm0, %v251_v10  ;;  %v709_v12 = vmax.f32 %v536_v11, 0.0 }
  0xe5   : > { %827 = vmatmul.f32.gmra.mxu1 %v709_v12 }
  0xe8   : > { %v538_v13 = vpop.f32.mrf.mxu0 }
  0xe9   : > { %v539_v15 = vadd.f32 %v2114_v36, %v538_v13 }
  0xeb   : > { %v710_v16 = vmax.f32 %v539_v15, 0.0  ;;  %1488 = vmatmul.msk.f32.gmra.mxu0 %vm298_vm0, %v252_v14 }
  0xed   : > { %830 = vmatmul.f32.gmra.mxu1 %v710_v16  ;;  %v268_v16 = vld [vmem:[%s2029_s17 + $0x150] sm:$0xff] }
  0xee   : > { %1504 = vmatmul.msk.f32.gmra.mxu3 %vm298_vm0, %v268_v16 }
  0xf0   : > { %v541_v17 = vpop.f32.mrf.mxu0 }
  0xf1   : > { %v542_v19 = vadd.f32 %v2114_v36, %v541_v17 }
  0xf3   : > { %v711_v20 = vmax.f32 %v542_v19, 0.0  ;;  %1489 = vmatmul.msk.f32.gmra.mxu0 %vm298_vm0, %v253_v18 }
  0xf5   : > { %833 = vmatmul.f32.gmra.mxu1 %v711_v20 }
  0xf8   : > { %v544_v22 = vpop.f32.mrf.mxu0 }
  0xf9   : > { %v545_v24 = vadd.f32 %v2114_v36, %v544_v22 }
  0xfb   : > { %v712_v25 = vmax.f32 %v545_v24, 0.0  ;;  %1490 = vmatmul.msk.f32.gmra.mxu0 %vm298_vm0, %v254_v23 }
  0xfd   : > { %836 = vmatmul.f32.gmra.mxu1 %v712_v25 }
 0x100   : > { %v547_v27 = vpop.f32.mrf.mxu0 }
 0x101   : > { %v548_v29 = vadd.f32 %v2114_v36, %v547_v27  ;;  %v269_v27 = vld [vmem:[%s2029_s17 + $0x158] sm:$0xff] }
 0x102   : > { %1505 = vmatmul.msk.f32.gmra.mxu3 %vm298_vm0, %v269_v27 }
 0x103   : > { %v713_v30 = vmax.f32 %v548_v29, 0.0  ;;  %1491 = vmatmul.msk.f32.gmra.mxu0 %vm298_vm0, %v255_v28 }
 0x105   : > { %839 = vmatmul.f32.gmra.mxu1 %v713_v30 }
 0x108   : > { %v550_v32 = vpop.f32.mrf.mxu0 }
 0x109   : > { %v551_v34 = vadd.f32 %v2114_v36, %v550_v32 }
 0x10b   : > { %v714_v35 = vmax.f32 %v551_v34, 0.0  ;;  %1492 = vmatmul.msk.f32.gmra.mxu0 %vm298_vm0, %v256_v33 }
 0x10d   : > { %842 = vmatmul.f32.gmra.mxu1 %v714_v35 }
 0x110   : > { %v553_v38 = vpop.f32.mrf.mxu0 }
 0x111   : > { %v554_v40 = vadd.f32 %v2114_v36, %v553_v38 }
 0x113   : > { %v715_v41 = vmax.f32 %v554_v40, 0.0  ;;  %1493 = vmatmul.msk.f32.gmra.mxu0 %vm298_vm0, %v257_v39  ;;  %v270_v39 = vld [vmem:[%s2029_s17 + $0x160] sm:$0xff] }
 0x114   : > { %1506 = vmatmul.msk.f32.gmra.mxu3 %vm298_vm0, %v270_v39 }
 0x115   : > { %845 = vmatmul.f32.gmra.mxu1 %v715_v41 }
 0x118   : > { %v556_v44 = vpop.f32.mrf.mxu0 }
 0x119   : > { %v557_v46 = vadd.f32 %v2114_v36, %v556_v44 }
 0x11a   : > { %v801_v47 = vpop.f32.mrf.mxu1 }
 0x11b   : > { %v716_v48 = vmax.f32 %v557_v46, 0.0  ;;  %v802_v49 = vadd.f32 %v2177_v43, %v801_v47  ;;  %1494 = vmatmul.msk.f32.gmra.mxu0 %vm298_vm0, %v258_v45 }
 0x11d   : > { %v993_v51 = vsub.f32 0.0, %v802_v49  ;;  %848 = vmatmul.f32.gmra.mxu1 %v716_v48 }
 0x11f   : > { %v1057_v52 = vmul.f32 1.442695, %v993_v51  ;;  %v271_v51 = vld [vmem:[%s2029_s17 + $0x168] sm:$0xff] }
 0x120   : > { %v559_v53 = vpop.f32.mrf.mxu0  ;;  %1507 = vmatmul.msk.f32.gmra.mxu3 %vm298_vm0, %v271_v51  ;;  %v2245_v51 = vpop.f32.mrf.mxu3 }
 0x121   : > { %1611 = vpow2.f32 %v1057_v52  ;;  %v560_v55 = vadd.f32 %v2114_v36, %v559_v53 }
 0x122   : > { %v804_v56 = vpop.f32.mrf.mxu1 }
 0x123   : > { %v717_v57 = vmax.f32 %v560_v55, 0.0  ;;  %v805_v58 = vadd.f32 %v2177_v43, %v804_v56  ;;  %1495 = vmatmul.msk.f32.gmra.mxu0 %vm298_vm0, %v259_v54 }
 0x125   : > { %v994_v60 = vsub.f32 0.0, %v805_v58  ;;  %851 = vmatmul.f32.gmra.mxu1 %v717_v57 }
 0x127   : > { %v1612_v61 = vpop.eup %1611  ;;  %v1059_v62 = vmul.f32 1.442695, %v994_v60 }
 0x128   : > { %v1185_v63 = vadd.f32 1.0, %v1612_v61  ;;  %v562_v0 = vpop.f32.mrf.mxu0 }
 0x129   : > { %1613 = vpow2.f32 %v1059_v62  ;;  %v563_v1 = vadd.f32 %v2114_v36, %v562_v0  ;;  %v272_v62 = vld [vmem:[%s2029_s17 + $0x170] sm:$0xff] }
 0x12a   : > { %1615 = vrcp.f32 %v1185_v63  ;;  %v807_v2 = vpop.f32.mrf.mxu1  ;;  %1508 = vmatmul.msk.f32.gmra.mxu3 %vm298_vm0, %v272_v62 }
 0x12b   : > { %v718_v3 = vmax.f32 %v563_v1, 0.0  ;;  %v808_v4 = vadd.f32 %v2177_v43, %v807_v2 }
 0x12d   : > { %v995_v6 = vsub.f32 0.0, %v808_v4  ;;  %854 = vmatmul.f32.gmra.mxu1 %v718_v3 }
 0x12f   : > { %v1614_v7 = vpop.eup %1613  ;;  %v1061_v8 = vmul.f32 1.442695, %v995_v6 }
 0x130   : > { %v1616_v9 = vpop.eup %1615  ;;  %v1186_v10 = vadd.f32 1.0, %v1614_v7  ;;  %v565_v11 = vpop.f32.mrf.mxu0 }
 0x131   : > { %1313 = vst [vmem:[%s2198_s10] sm:$0xff] %v1616_v9  ;;  %1617 = vpow2.f32 %v1061_v8  ;;  %v566_v12 = vadd.f32 %v2114_v36, %v565_v11  ;;  %v273_v9 = vld [vmem:[%s2029_s17 + $0x178] sm:$0xff] }
 0x132   : > { %1619 = vrcp.f32 %v1186_v10  ;;  %v810_v13 = vpop.f32.mrf.mxu1  ;;  %1509 = vmatmul.msk.f32.gmra.mxu3 %vm298_vm0, %v273_v9 }
 0x133   : > { %v719_v14 = vmax.f32 %v566_v12, 0.0  ;;  %v811_v15 = vadd.f32 %v2177_v43, %v810_v13 }
 0x135   : > { %v996_v17 = vsub.f32 0.0, %v811_v15  ;;  %857 = vmatmul.f32.gmra.mxu1 %v719_v14 }
 0x137   : > { %v1618_v18 = vpop.eup %1617  ;;  %v1063_v19 = vmul.f32 1.442695, %v996_v17 }
 0x138   : > { %v1620_v20 = vpop.eup %1619  ;;  %v1187_v21 = vadd.f32 1.0, %v1618_v18  ;;  %v568_v22 = vpop.f32.mrf.mxu0 }
 0x139   : > { %1314 = vst [vmem:[%s2198_s10 + $0x8] sm:$0xff] %v1620_v20  ;;  %1621 = vpow2.f32 %v1063_v19  ;;  %v569_v23 = vadd.f32 %v2114_v36, %v568_v22  ;;  %v274_v20 = vld [vmem:[%s2029_s17 + $0x180] sm:$0xff] }
 0x13a   : > { %1623 = vrcp.f32 %v1187_v21  ;;  %v813_v24 = vpop.f32.mrf.mxu1  ;;  %1510 = vmatmul.msk.f32.gmra.mxu3 %vm298_vm0, %v274_v20 }
 0x13b   : > { %v720_v25 = vmax.f32 %v569_v23, 0.0  ;;  %v814_v26 = vadd.f32 %v2177_v43, %v813_v24 }
 0x13d   : > { %v997_v28 = vsub.f32 0.0, %v814_v26  ;;  %860 = vmatmul.f32.gmra.mxu1 %v720_v25 }
 0x13f   : > { %v1622_v29 = vpop.eup %1621  ;;  %v1065_v30 = vmul.f32 1.442695, %v997_v28 }
 0x140   : > { %v1624_v31 = vpop.eup %1623  ;;  %v1188_v32 = vadd.f32 1.0, %v1622_v29  ;;  %v571_v33 = vpop.f32.mrf.mxu0 }
 0x141   : > { %1315 = vst [vmem:[%s2198_s10 + $0x10] sm:$0xff] %v1624_v31  ;;  %1625 = vpow2.f32 %v1065_v30  ;;  %v572_v34 = vadd.f32 %v2114_v36, %v571_v33  ;;  %v275_v31 = vld [vmem:[%s2029_s17 + $0x188] sm:$0xff] }
 0x142   : > { %1627 = vrcp.f32 %v1188_v32  ;;  %v816_v35 = vpop.f32.mrf.mxu1  ;;  %1511 = vmatmul.msk.f32.gmra.mxu3 %vm298_vm0, %v275_v31 }
 0x143   : > { %v721_v37 = vmax.f32 %v572_v34, 0.0  ;;  %v817_v38 = vadd.f32 %v2177_v43, %v816_v35 }
 0x145   : > { %v998_v40 = vsub.f32 0.0, %v817_v38  ;;  %863 = vmatmul.f32.gmra.mxu1 %v721_v37 }
 0x147   : > { %v1626_v41 = vpop.eup %1625  ;;  %v1067_v42 = vmul.f32 1.442695, %v998_v40 }
 0x148   : > { %v1628_v44 = vpop.eup %1627  ;;  %v1189_v45 = vadd.f32 1.0, %v1626_v41  ;;  %v574_v46 = vpop.f32.mrf.mxu0 }
 0x149   : > { %1316 = vst [vmem:[%s2198_s10 + $0x18] sm:$0xff] %v1628_v44  ;;  %1629 = vpow2.f32 %v1067_v42  ;;  %v575_v47 = vadd.f32 %v2114_v36, %v574_v46  ;;  %v276_v44 = vld [vmem:[%s2029_s17 + $0x190] sm:$0xff] }
 0x14a   : > { %1631 = vrcp.f32 %v1189_v45  ;;  %v819_v48 = vpop.f32.mrf.mxu1  ;;  %1512 = vmatmul.msk.f32.gmra.mxu3 %vm298_vm0, %v276_v44 }
 0x14b   : > { %v722_v49 = vmax.f32 %v575_v47, 0.0  ;;  %v820_v50 = vadd.f32 %v2177_v43, %v819_v48 }
 0x14d   : > { %v999_v52 = vsub.f32 0.0, %v820_v50  ;;  %866 = vmatmul.f32.gmra.mxu1 %v722_v49 }
 0x14f   : > { %v1630_v53 = vpop.eup %1629  ;;  %v1069_v54 = vmul.f32 1.442695, %v999_v52 }
 0x150   : > { %v1632_v55 = vpop.eup %1631  ;;  %v1190_v56 = vadd.f32 1.0, %v1630_v53  ;;  %v577_v57 = vpop.f32.mrf.mxu0 }
 0x151   : > { %1317 = vst [vmem:[%s2198_s10 + $0x20] sm:$0xff] %v1632_v55  ;;  %1633 = vpow2.f32 %v1069_v54  ;;  %v578_v58 = vadd.f32 %v2114_v36, %v577_v57 }
 0x152   : > { %1635 = vrcp.f32 %v1190_v56  ;;  %v822_v59 = vpop.f32.mrf.mxu1  ;;  %v277_v56 = vld [vmem:[%s2029_s17 + $0x198] sm:$0xff] }
 0x153   : > { %v723_v60 = vmax.f32 %v578_v58, 0.0  ;;  %v823_v61 = vadd.f32 %v2177_v43, %v822_v59  ;;  %1513 = vmatmul.msk.f32.gmra.mxu3 %vm298_vm0, %v277_v56 }
 0x155   : > { %v1000_v63 = vsub.f32 0.0, %v823_v61  ;;  %869 = vmatmul.f32.gmra.mxu1 %v723_v60 }
 0x157   : > { %v1634_v0 = vpop.eup %1633  ;;  %v1071_v1 = vmul.f32 1.442695, %v1000_v63  ;;  %v2252_v63 = vpop.f32.mrf.mxu3 }
 0x158   : > { %v1636_v2 = vpop.eup %1635  ;;  %v1191_v3 = vadd.f32 1.0, %v1634_v0  ;;  %v580_v4 = vpop.f32.mrf.mxu0 }
 0x159   : > { %1318 = vst [vmem:[%s2198_s10 + $0x28] sm:$0xff] %v1636_v2  ;;  %1637 = vpow2.f32 %v1071_v1  ;;  %v581_v5 = vadd.f32 %v2114_v36, %v580_v4  ;;  %v278_v4 = vld [vmem:[%s2029_s17 + $0x1a0] sm:$0xff] }
 0x15a   : > { %1639 = vrcp.f32 %v1191_v3  ;;  %v825_v6 = vpop.f32.mrf.mxu1 }
 0x15b   : > { %v724_v7 = vmax.f32 %v581_v5, 0.0  ;;  %v826_v8 = vadd.f32 %v2177_v43, %v825_v6  ;;  %1514 = vmatmul.msk.f32.gmra.mxu3 %vm298_vm0, %v278_v4 }
 0x15d   : > { %v1001_v10 = vsub.f32 0.0, %v826_v8  ;;  %872 = vmatmul.f32.gmra.mxu1 %v724_v7 }
 0x15f   : > { %v1638_v11 = vpop.eup %1637  ;;  %v1073_v12 = vmul.f32 1.442695, %v1001_v10 }
 0x160   : > { %v1640_v13 = vpop.eup %1639  ;;  %v1192_v14 = vadd.f32 1.0, %v1638_v11  ;;  %v583_v15 = vpop.f32.mrf.mxu0 }
 0x161   : > { %1319 = vst [vmem:[%s2198_s10 + $0x30] sm:$0xff] %v1640_v13  ;;  %1641 = vpow2.f32 %v1073_v12  ;;  %v584_v16 = vadd.f32 %v2114_v36, %v583_v15  ;;  %v2259_v11 = vpop.f32.mrf.mxu3 }
 0x162   : > { %1643 = vrcp.f32 %v1192_v14  ;;  %v828_v17 = vpop.f32.mrf.mxu1 }
 0x163   : > { %v725_v18 = vmax.f32 %v584_v16, 0.0  ;;  %v829_v19 = vadd.f32 %v2177_v43, %v828_v17  ;;  %v279_v16 = vld [vmem:[%s2029_s17 + $0x1a8] sm:$0xff] }
 0x164   : > { %1515 = vmatmul.msk.f32.gmra.mxu3 %vm298_vm0, %v279_v16  ;;  %v617_v16 = vadd.f32 %v2114_v36, %v2259_v11 }
 0x165   : > { %v1002_v21 = vsub.f32 0.0, %v829_v19  ;;  %875 = vmatmul.f32.gmra.mxu1 %v725_v18 }
 0x167   : > { %v1642_v22 = vpop.eup %1641  ;;  %v1075_v23 = vmul.f32 1.442695, %v1002_v21 }
 0x168   : > { %v1644_v24 = vpop.eup %1643  ;;  %v1193_v25 = vadd.f32 1.0, %v1642_v22  ;;  %v586_v26 = vpop.f32.mrf.mxu0 }
 0x169   : > { %1320 = vst [vmem:[%s2198_s10 + $0x38] sm:$0xff] %v1644_v24  ;;  %1645 = vpow2.f32 %v1075_v23  ;;  %v587_v27 = vadd.f32 %v2114_v36, %v586_v26  ;;  %v2266_v23 = vpop.f32.mrf.mxu3 }
 0x16a   : > { %1647 = vrcp.f32 %v1193_v25  ;;  %v831_v28 = vpop.f32.mrf.mxu1 }
 0x16b   : > { %v726_v29 = vmax.f32 %v587_v27, 0.0  ;;  %v832_v30 = vadd.f32 %v2177_v43, %v831_v28  ;;  %v280_v28 = vld [vmem:[%s2029_s17 + $0x1b0] sm:$0xff] }
 0x16c   : > { %1516 = vmatmul.msk.f32.gmra.mxu3 %vm298_vm0, %v280_v28 }
 0x16d   : > { %v1003_v32 = vsub.f32 0.0, %v832_v30  ;;  %878 = vmatmul.f32.gmra.mxu1 %v726_v29 }
 0x16f   : > { %v1646_v33 = vpop.eup %1645  ;;  %v1077_v34 = vmul.f32 1.442695, %v1003_v32 }
 0x170   : > { %v1648_v35 = vpop.eup %1647  ;;  %v1194_v37 = vadd.f32 1.0, %v1646_v33  ;;  %v589_v38 = vpop.f32.mrf.mxu0 }
 0x171   : > { %1321 = vst [vmem:[%s2198_s10 + $0x40] sm:$0xff] %v1648_v35  ;;  %1649 = vpow2.f32 %v1077_v34  ;;  %v590_v39 = vadd.f32 %v2114_v36, %v589_v38  ;;  %v2273_v35 = vpop.f32.mrf.mxu3 }
 0x172   : > { %1651 = vrcp.f32 %v1194_v37  ;;  %v834_v40 = vpop.f32.mrf.mxu1 }
 0x173   : > { %v727_v41 = vmax.f32 %v590_v39, 0.0  ;;  %v835_v42 = vadd.f32 %v2177_v43, %v834_v40 }
 0x175   : > { %v1004_v45 = vsub.f32 0.0, %v835_v42  ;;  %881 = vmatmul.f32.gmra.mxu1 %v727_v41  ;;  %v281_v41 = vld [vmem:[%s2029_s17 + $0x1b8] sm:$0xff] }
 0x176   : > { %1517 = vmatmul.msk.f32.gmra.mxu3 %vm298_vm0, %v281_v41 }
 0x177   : > { %v1650_v46 = vpop.eup %1649  ;;  %v1079_v47 = vmul.f32 1.442695, %v1004_v45 }
 0x178   : > { %v1652_v48 = vpop.eup %1651  ;;  %v1195_v49 = vadd.f32 1.0, %v1650_v46  ;;  %v592_v50 = vpop.f32.mrf.mxu0 }
 0x179   : > { %1322 = vst [vmem:[%s2198_s10 + $0x48] sm:$0xff] %v1652_v48  ;;  %1653 = vpow2.f32 %v1079_v47  ;;  %v593_v52 = vadd.f32 %v2114_v36, %v592_v50 }
 0x17a   : > { %1655 = vrcp.f32 %v1195_v49  ;;  %v837_v53 = vpop.f32.mrf.mxu1  ;;  %v2280_v49 = vpop.f32.mrf.mxu3 }
 0x17b   : > { %v728_v54 = vmax.f32 %v593_v52, 0.0  ;;  %v838_v55 = vadd.f32 %v2177_v43, %v837_v53 }
 0x17d   : > { %v1005_v57 = vsub.f32 0.0, %v838_v55  ;;  %884 = vmatmul.f32.gmra.mxu1 %v728_v54  ;;  %v282_v55 = vld [vmem:[%s2029_s17 + $0x1c0] sm:$0xff] }
 0x17e   : > { %1518 = vmatmul.msk.f32.gmra.mxu3 %vm298_vm0, %v282_v55 }
 0x17f   : > { %v1654_v58 = vpop.eup %1653  ;;  %v1081_v59 = vmul.f32 1.442695, %v1005_v57 }
 0x180   : > { %v1656_v60 = vpop.eup %1655  ;;  %v1196_v61 = vadd.f32 1.0, %v1654_v58  ;;  %v595_v62 = vpop.f32.mrf.mxu0  ;;  %v611_v58 = vadd.f32 %v2114_v36, %v2245_v51 }
 0x181   : > { %1323 = vst [vmem:[%s2198_s10 + $0x50] sm:$0xff] %v1656_v60  ;;  %1657 = vpow2.f32 %v1081_v59  ;;  %v596_v0 = vadd.f32 %v2114_v36, %v595_v62 }
 0x182   : > { %1659 = vrcp.f32 %v1196_v61  ;;  %v840_v1 = vpop.f32.mrf.mxu1  ;;  %v2289_v62 = vpop.f32.mrf.mxu3 }
 0x183   : > { %v729_v2 = vmax.f32 %v596_v0, 0.0  ;;  %v841_v3 = vadd.f32 %v2177_v43, %v840_v1 }
 0x185   : > { %v1006_v5 = vsub.f32 0.0, %v841_v3  ;;  %887 = vmatmul.f32.gmra.mxu1 %v729_v2  ;;  %v734_v2 = vmax.f32 %v611_v58, 0.0  ;;  %v283_v3 = vld [vmem:[%s2029_s17 + $0x1c8] sm:$0xff] }
 0x186   : > { %1519 = vmatmul.msk.f32.gmra.mxu3 %vm298_vm0, %v283_v3 }
 0x187   : > { %v1658_v6 = vpop.eup %1657  ;;  %v1083_v7 = vmul.f32 1.442695, %v1006_v5  ;;  %v614_v5 = vadd.f32 %v2114_v36, %v2252_v63 }
 0x188   : > { %v1660_v8 = vpop.eup %1659  ;;  %v1197_v9 = vadd.f32 1.0, %v1658_v6  ;;  %v598_v10 = vpop.f32.mrf.mxu0 }
 0x189   : > { %1324 = vst [vmem:[%s2198_s10 + $0x58] sm:$0xff] %v1660_v8  ;;  %1661 = vpow2.f32 %v1083_v7  ;;  %v599_v12 = vadd.f32 %v2114_v36, %v598_v10 }
 0x18a   : > { %1663 = vrcp.f32 %v1197_v9  ;;  %v843_v13 = vpop.f32.mrf.mxu1  ;;  %v2297_v9 = vpop.f32.mrf.mxu3 }
 0x18b   : > { %v730_v14 = vmax.f32 %v599_v12, 0.0  ;;  %v844_v15 = vadd.f32 %v2177_v43, %v843_v13  ;;  %v735_v13 = vmax.f32 %v614_v5, 0.0 }
 0x18d   : > { %v1007_v17 = vsub.f32 0.0, %v844_v15  ;;  %890 = vmatmul.f32.gmra.mxu1 %v730_v14  ;;  %v284_v14 = vld [vmem:[%s2029_s17 + $0x1d0] sm:$0xff] }
 0x18e   : > { %1520 = vmatmul.msk.f32.gmra.mxu3 %vm298_vm0, %v284_v14 }
 0x18f   : > { %v1662_v18 = vpop.eup %1661  ;;  %v1085_v19 = vmul.f32 1.442695, %v1007_v17 }
 0x190   : > { %v1664_v20 = vpop.eup %1663  ;;  %v1198_v21 = vadd.f32 1.0, %v1662_v18  ;;  %v601_v22 = vpop.f32.mrf.mxu0 }
 0x191   : > { %1325 = vst [vmem:[%s2198_s10 + $0x60] sm:$0xff] %v1664_v20  ;;  %1665 = vpow2.f32 %v1085_v19  ;;  %v602_v24 = vadd.f32 %v2114_v36, %v601_v22 }
 0x192   : > { %1667 = vrcp.f32 %v1198_v21  ;;  %v846_v25 = vpop.f32.mrf.mxu1  ;;  %v2305_v20 = vpop.f32.mrf.mxu3 }
 0x193   : > { %v731_v26 = vmax.f32 %v602_v24, 0.0  ;;  %v847_v27 = vadd.f32 %v2177_v43, %v846_v25  ;;  %v736_v24 = vmax.f32 %v617_v16, 0.0  ;;  %v285_v25 = vld [vmem:[%s2029_s17 + $0x1d8] sm:$0xff] }
 0x195   : > { %v1008_v29 = vsub.f32 0.0, %v847_v27  ;;  %893 = vmatmul.f32.vlgmr.msra.gmra.mxu2 %v731_v26  ;;  %v620_v27 = vadd.f32 %v2114_v36, %v2266_v23 }
 0x196   : > { %1521 = vmatmul.msk.f32.gmra.mxu3 %vm298_vm0, %v285_v25 }
 0x197   : > { %v1666_v30 = vpop.eup %1665  ;;  %v1087_v31 = vmul.f32 1.442695, %v1008_v29 }
 0x198   : > { %v1668_v32 = vpop.eup %1667  ;;  %v1199_v33 = vadd.f32 1.0, %v1666_v30  ;;  %v604_v34 = vpop.f32.mrf.mxu0 }
 0x199   : > { %1326 = vst [vmem:[%s2198_s10 + $0x68] sm:$0xff] %v1668_v32  ;;  %1669 = vpow2.f32 %v1087_v31  ;;  %v605_v37 = vadd.f32 %v2114_v36, %v604_v34  ;;  %v737_v34 = vmax.f32 %v620_v27, 0.0 }
 0x19a   : > { %1671 = vrcp.f32 %v1199_v33  ;;  %v849_v38 = vpop.f32.mrf.mxu1  ;;  %v2313_v31 = vpop.f32.mrf.mxu3 }
 0x19b   : > { %v732_v39 = vmax.f32 %v605_v37, 0.0  ;;  %v850_v40 = vadd.f32 %v2177_v43, %v849_v38  ;;  %v286_v37 = vld [vmem:[%s2029_s17 + $0x1e0] sm:$0xff] }
 0x19d   : > { %v1009_v42 = vsub.f32 0.0, %v850_v40  ;;  %896 = vmatmul.f32.gmra.mxu2 %v732_v39  ;;  %v623_v39 = vadd.f32 %v2114_v36, %v2273_v35 }
 0x19e   : > { %1522 = vmatmul.msk.f32.gmra.mxu3 %vm298_vm0, %v286_v37 }
 0x19f   : > { %v1670_v44 = vpop.eup %1669  ;;  %v1089_v45 = vmul.f32 1.442695, %v1009_v42 }
 0x1a0   : > { %v1672_v46 = vpop.eup %1671  ;;  %v1200_v47 = vadd.f32 1.0, %v1670_v44  ;;  %v607_v48 = vpop.f32.mrf.mxu0 }
 0x1a1   : > { %1327 = vst [vmem:[%s2198_s10 + $0x70] sm:$0xff] %v1672_v46  ;;  %1673 = vpow2.f32 %v1089_v45  ;;  %v608_v50 = vadd.f32 %v2114_v36, %v607_v48  ;;  %v287_v48 = vld [vmem:[%s2029_s17 + $0x1e8] sm:$0xff] }
 0x1a2   : > { %1675 = vrcp.f32 %v1200_v47  ;;  %v852_v52 = vpop.f32.mrf.mxu1  ;;  %v2321_v44 = vpop.f32.mrf.mxu3  ;;  %v738_v47 = vmax.f32 %v623_v39, 0.0 }
 0x1a3   : > { %v733_v53 = vmax.f32 %v608_v50, 0.0  ;;  %v853_v54 = vadd.f32 %v2177_v43, %v852_v52  ;;  %v626_v52 = vadd.f32 %v2114_v36, %v2280_v49 }
 0x1a5   : > { %v1010_v56 = vsub.f32 0.0, %v853_v54  ;;  %899 = vmatmul.f32.gmra.mxu2 %v733_v53 }
 0x1a6   : > { %1523 = vmatmul.msk.f32.gmra.mxu3 %vm298_vm0, %v287_v48 }
 0x1a7   : > { %v1674_v57 = vpop.eup %1673  ;;  %v1091_v59 = vmul.f32 1.442695, %v1010_v56 }
 0x1a8   : > { %v1676_v60 = vpop.eup %1675  ;;  %v1201_v61 = vadd.f32 1.0, %v1674_v57 }
 0x1a9   : > { %1328 = vst [vmem:[%s2198_s10 + $0x78] sm:$0xff] %v1676_v60  ;;  %1677 = vpow2.f32 %v1091_v59  ;;  %v739_v59 = vmax.f32 %v626_v52, 0.0  ;;  %v288_v60 = vld [vmem:[%s2029_s17 + $0x1f0] sm:$0xff] }
 0x1aa   : > { %1679 = vrcp.f32 %v1201_v61  ;;  %v855_v0 = vpop.f32.mrf.mxu1  ;;  %v2329_v56 = vpop.f32.mrf.mxu3 }
 0x1ab   : > { %v856_v1 = vadd.f32 %v2177_v43, %v855_v0  ;;  %v629_v0 = vadd.f32 %v2114_v36, %v2289_v62  ;;  %v632_v62 = vadd.f32 %v2114_v36, %v2297_v9  ;;  %v2352_v36 = vld [vmem:[%s2544_s2] ss:$0 sm:$0xff] }
 0x1ac   : > { %v635_v9 = vadd.f32 %v2352_v36, %v2305_v20 }
 0x1ad   : > { %v1011_v4 = vsub.f32 0.0, %v856_v1  ;;  %902 = vmatmul.f32.gmra.mxu2 %v734_v2 }
 0x1ae   : > { %1524 = vmatmul.msk.f32.gmra.mxu3 %vm298_vm0, %v288_v60 }
 0x1af   : > { %v1678_v51 = vpop.eup %1677  ;;  %v1093_v6 = vmul.f32 1.442695, %v1011_v4 }
 0x1b0   : > { %v1680_v7 = vpop.eup %1679  ;;  %v1202_v8 = vadd.f32 1.0, %v1678_v51 }
 0x1b1   : > { %1329 = vst [vmem:[%s2198_s10 + $0x80] sm:$0xff] %v1680_v7  ;;  %1681 = vpow2.f32 %v1093_v6  ;;  %v740_v6 = vmax.f32 %v629_v0, 0.0  ;;  %v289_v7 = vld [vmem:[%s2029_s17 + $0x1f8] sm:$0xff]  ;;  %s1889_s17 = scalar_lea.hbm %s2547_s5, 1024 }
 0x1b2   : > { %1683 = vrcp.f32 %v1202_v8  ;;  %v858_v10 = vpop.f32.mrf.mxu1  ;;  %v2337_v4 = vpop.f32.mrf.mxu3  ;;  %p1891_p1 = scmp.lt.s32.totalorder %s1889_s17, %s1885_s22 }
 0x1b3   : > { %v859_v12 = vadd.f32 %v2177_v43, %v858_v10  ;;  %v647_v0 = vadd.f32 %v2352_v36, %v2337_v4 }
 0x1b4   : > { %p1892_p2 = por %p1891_p1, %p1890_p0 }
 0x1b5   : > { %v1012_v15 = vsub.f32 0.0, %v859_v12  ;;  %905 = vmatmul.f32.gmra.mxu2 %v735_v13 }
 0x1b6   : > { %1525 = vmatmul.msk.f32.gmra.mxu3 %vm298_vm0, %v289_v7  ;;  %p1893_p3 = pnand %p1892_p2, %p1888_p13 }
 0x1b7   : > { %v1682_v63 = vpop.eup %1681  ;;  %v1095_v17 = vmul.f32 1.442695, %v1012_v15 }
 0x1b8   : > { %v1684_v18 = vpop.eup %1683  ;;  %v1203_v19 = vadd.f32 1.0, %v1682_v63 }
 0x1b9   : > { %1330 = vst [vmem:[%s2198_s10 + $0x88] sm:$0xff] %v1684_v18  ;;  %1685 = vpow2.f32 %v1095_v17  ;;  %v741_v17 = vmax.f32 %v632_v62, 0.0 }
 0x1ba   : > { %1687 = vrcp.f32 %v1203_v19  ;;  %v861_v21 = vpop.f32.mrf.mxu1  ;;  %v2345_v15 = vpop.f32.mrf.mxu3 }
 0x1bb   : > { %v862_v22 = vadd.f32 %v2177_v43, %v861_v21 }
 0x1bd   : > { %v1013_v26 = vsub.f32 0.0, %v862_v22  ;;  %908 = vmatmul.f32.gmra.mxu2 %v736_v24 }
 0x1bf   : > { %v1686_v11 = vpop.eup %1685  ;;  %v1097_v28 = vmul.f32 1.442695, %v1013_v26 }
 0x1c0   : > { %v1688_v29 = vpop.eup %1687  ;;  %v1204_v30 = vadd.f32 1.0, %v1686_v11  ;;  %v742_v11 = vmax.f32 %v635_v9, 0.0 }
 0x1c1   : > { %1331 = vst [vmem:[%s2198_s10 + $0x90] sm:$0xff] %v1688_v29  ;;  %1689 = vpow2.f32 %v1097_v28 }
 0x1c2   : > { %1691 = vrcp.f32 %v1204_v30  ;;  %v864_v32 = vpop.f32.mrf.mxu1  ;;  %v2356_v25 = vpop.f32.mrf.mxu3  ;;  %v638_v30 = vadd.f32 %v2352_v36, %v2313_v31 }
 0x1c3   : > { %v865_v33 = vadd.f32 %v2177_v43, %v864_v32 }
 0x1c5   : > { %v1014_v38 = vsub.f32 0.0, %v865_v33  ;;  %911 = vmatmul.f32.gmra.mxu2 %v737_v34 }
 0x1c7   : > { %v1690_v23 = vpop.eup %1689  ;;  %v1099_v40 = vmul.f32 1.442695, %v1014_v38  ;;  %v743_v38 = vmax.f32 %v638_v30, 0.0 }
 0x1c8   : > { %v1692_v41 = vpop.eup %1691  ;;  %v1205_v42 = vadd.f32 1.0, %v1690_v23 }
 0x1c9   : > { %1332 = vst [vmem:[%s2198_s10 + $0x98] sm:$0xff] %v1692_v41  ;;  %1693 = vpow2.f32 %v1099_v40  ;;  %v641_v41 = vadd.f32 %v2352_v36, %v2321_v44 }
 0x1ca   : > { %1695 = vrcp.f32 %v1205_v42  ;;  %v867_v45 = vpop.f32.mrf.mxu1  ;;  %v2362_v34 = vpop.f32.mrf.mxu3 }
 0x1cb   : > { %v868_v46 = vadd.f32 %v2177_v43, %v867_v45  ;;  %v744_v48 = vmax.f32 %v641_v41, 0.0 }
 0x1cd   : > { %v1015_v50 = vsub.f32 0.0, %v868_v46  ;;  %914 = vmatmul.f32.gmra.mxu2 %v738_v47 }
 0x1cf   : > { %v1694_v35 = vpop.eup %1693  ;;  %v1101_v53 = vmul.f32 1.442695, %v1015_v50 }
 0x1d0   : > { %v1696_v54 = vpop.eup %1695  ;;  %v1206_v55 = vadd.f32 1.0, %v1694_v35 }
 0x1d1   : > { %1333 = vst [vmem:[%s2198_s10 + $0xa0] sm:$0xff] %v1696_v54  ;;  %1697 = vpow2.f32 %v1101_v53  ;;  %v644_v53 = vadd.f32 %v2352_v36, %v2329_v56 }
 0x1d2   : > { %1699 = vrcp.f32 %v1206_v55  ;;  %v870_v57 = vpop.f32.mrf.mxu1  ;;  %v2368_v46 = vpop.f32.mrf.mxu3 }
 0x1d3   : > { %v871_v58 = vadd.f32 %v2177_v43, %v870_v57 }
 0x1d5   : > { %v1016_v61 = vsub.f32 0.0, %v871_v58  ;;  %917 = vmatmul.f32.gmra.mxu2 %v739_v59  ;;  %v745_v59 = vmax.f32 %v644_v53, 0.0 }
 0x1d7   : > { %v1698_v49 = vpop.eup %1697  ;;  %v1103_v1 = vmul.f32 1.442695, %v1016_v61 }
 0x1d8   : > { %v1700_v2 = vpop.eup %1699  ;;  %v1207_v3 = vadd.f32 1.0, %v1698_v49 }
 0x1d9   : > { %1334 = vst [vmem:[%s2198_s10 + $0xa8] sm:$0xff] %v1700_v2  ;;  %1701 = vpow2.f32 %v1103_v1 }
 0x1da   : > { %1703 = vrcp.f32 %v1207_v3  ;;  %v873_v51 = vpop.f32.mrf.mxu1  ;;  %v2374_v57 = vpop.f32.mrf.mxu3 }
 0x1db   : > { %v874_v5 = vadd.f32 %v2177_v43, %v873_v51 }
 0x1dd   : > { %v1017_v8 = vsub.f32 0.0, %v874_v5  ;;  %920 = vmatmul.f32.gmra.mxu2 %v740_v6  ;;  %v746_v5 = vmax.f32 %v647_v0, 0.0 }
 0x1df   : > { %v1702_v10 = vpop.eup %1701  ;;  %v1105_v12 = vmul.f32 1.442695, %v1017_v8 }
 0x1e0   : > { %v1704_v13 = vpop.eup %1703  ;;  %v1208_v14 = vadd.f32 1.0, %v1702_v10  ;;  %v650_v10 = vadd.f32 %v2352_v36, %v2345_v15 }
 0x1e1   : > { %1335 = vst [vmem:[%s2198_s10 + $0xb0] sm:$0xff] %v1704_v13  ;;  %1705 = vpow2.f32 %v1105_v12 }
 0x1e2   : > { %1707 = vrcp.f32 %v1208_v14  ;;  %v876_v63 = vpop.f32.mrf.mxu1  ;;  %v2380_v3 = vpop.f32.mrf.mxu3  ;;  %v747_v14 = vmax.f32 %v650_v10, 0.0 }
 0x1e3   : > { %v877_v16 = vadd.f32 %v2177_v43, %v876_v63 }
 0x1e5   : > { %v1018_v18 = vsub.f32 0.0, %v877_v16  ;;  %923 = vmatmul.f32.gmra.mxu2 %v741_v17  ;;  %v653_v16 = vadd.f32 %v2352_v36, %v2356_v25 }
 0x1e7   : > { %v1706_v19 = vpop.eup %1705  ;;  %v1107_v21 = vmul.f32 1.442695, %v1018_v18 }
 0x1e8   : > { %v1708_v22 = vpop.eup %1707  ;;  %v1209_v24 = vadd.f32 1.0, %v1706_v19 }
 0x1e9   : > { %1336 = vst [vmem:[%s2198_s10 + $0xb8] sm:$0xff] %v1708_v22  ;;  %1709 = vpow2.f32 %v1107_v21  ;;  %v748_v21 = vmax.f32 %v653_v16, 0.0 }
 0x1ea   : > { %1711 = vrcp.f32 %v1209_v24  ;;  %v879_v26 = vpop.f32.mrf.mxu1  ;;  %v2386_v13 = vpop.f32.mrf.mxu3 }
 0x1eb   : > { %v880_v27 = vadd.f32 %v2177_v43, %v879_v26  ;;  %v656_v26 = vadd.f32 %v2352_v36, %v2362_v34  ;;  %v659_v34 = vadd.f32 %v2352_v36, %v2368_v46 }
 0x1ed   : > { %v1019_v28 = vsub.f32 0.0, %v880_v27  ;;  %926 = vmatmul.f32.gmra.mxu2 %v742_v11 }
 0x1ef   : > { %v1710_v29 = vpop.eup %1709  ;;  %v1109_v20 = vmul.f32 1.442695, %v1019_v28  ;;  %v2403_v28 = vld [vmem:[%s2546_s4] ss:$0 sm:$0xff] }
 0x1f0   : > { %v1712_v32 = vpop.eup %1711  ;;  %v1210_v33 = vadd.f32 1.0, %v1710_v29  ;;  %v749_v29 = vmax.f32 %v656_v26, 0.0 }
 0x1f1   : > { %1337 = vst [vmem:[%s2198_s10 + $0xc0] sm:$0xff] %v1712_v32  ;;  %1713 = vpow2.f32 %v1109_v20 }
 0x1f2   : > { %1715 = vrcp.f32 %v1210_v33  ;;  %v882_v37 = vpop.f32.mrf.mxu1  ;;  %v2391_v15 = vpop.f32.mrf.mxu3 }
 0x1f3   : > { %v883_v23 = vadd.f32 %v2177_v43, %v882_v37 }
 0x1f5   : > { %v1020_v39 = vsub.f32 0.0, %v883_v23  ;;  %929 = vmatmul.f32.gmra.mxu2 %v743_v38 }
 0x1f7   : > { %v1714_v40 = vpop.eup %1713  ;;  %v1111_v31 = vmul.f32 1.442695, %v1020_v39  ;;  %v750_v39 = vmax.f32 %v659_v34, 0.0 }
 0x1f8   : > { %v1716_v42 = vpop.eup %1715  ;;  %v1211_v45 = vadd.f32 1.0, %v1714_v40 }
 0x1f9   : > { %1338 = vst [vmem:[%s2198_s10 + $0xc8] sm:$0xff] %v1716_v42  ;;  %1717 = vpow2.f32 %v1111_v31 }
 0x1fa   : > { %1719 = vrcp.f32 %v1211_v45  ;;  %v885_v47 = vpop.f32.mrf.mxu1  ;;  %v2397_v27 = vpop.f32.mrf.mxu3 }
 0x1fb   : > { %v886_v50 = vadd.f32 %v2177_v43, %v885_v47  ;;  %v662_v47 = vadd.f32 %v2352_v36, %v2374_v57 }
 0x1fd   : > { %v1021_v35 = vsub.f32 0.0, %v886_v50  ;;  %932 = vmatmul.f32.gmra.mxu2 %v744_v48 }
 0x1ff   : > { %v1718_v52 = vpop.eup %1717  ;;  %v1113_v44 = vmul.f32 1.442695, %v1021_v35  ;;  %v751_v35 = vmax.f32 %v662_v47, 0.0 }
 0x200   : > { %v1720_v54 = vpop.eup %1719  ;;  %v1212_v55 = vadd.f32 1.0, %v1718_v52 }
 0x201   : > { %1339 = vst [vmem:[%s2198_s10 + $0xd0] sm:$0xff] %v1720_v54  ;;  %1721 = vpow2.f32 %v1113_v44 }
 0x202   : > { %1723 = vrcp.f32 %v1212_v55  ;;  %v888_v58 = vpop.f32.mrf.mxu1  ;;  %v2408_v38 = vpop.f32.mrf.mxu3 }
 0x203   : > { %v889_v60 = vadd.f32 %v2177_v43, %v888_v58  ;;  %v665_v58 = vadd.f32 %v2352_v36, %v2380_v3 }
 0x205   : > { %v1022_v61 = vsub.f32 0.0, %v889_v60  ;;  %935 = vmatmul.f32.gmra.mxu2 %v745_v59 }
 0x207   : > { %v1722_v49 = vpop.eup %1721  ;;  %v1115_v56 = vmul.f32 1.442695, %v1022_v61  ;;  %v752_v61 = vmax.f32 %v665_v58, 0.0 }
 0x208   : > { %v1724_v1 = vpop.eup %1723  ;;  %v1213_v2 = vadd.f32 1.0, %v1722_v49 }
 0x209   : > { %1340 = vst [vmem:[%s2198_s10 + $0xd8] sm:$0xff] %v1724_v1  ;;  %1725 = vpow2.f32 %v1115_v56 }
 0x20a   : > { %1727 = vrcp.f32 %v1213_v2  ;;  %v891_v51 = vpop.f32.mrf.mxu1  ;;  %v2414_v48 = vpop.f32.mrf.mxu3 }
 0x20b   : > { %v892_v6 = vadd.f32 %v2177_v43, %v891_v51  ;;  %v668_v51 = vadd.f32 %v2352_v36, %v2386_v13 }
 0x20d   : > { %v1023_v7 = vsub.f32 0.0, %v892_v6  ;;  %938 = vmatmul.f32.gmra.mxu2 %v746_v5 }
 0x20f   : > { %v1726_v8 = vpop.eup %1725  ;;  %v1117_v4 = vmul.f32 1.442695, %v1023_v7  ;;  %v753_v7 = vmax.f32 %v668_v51, 0.0 }
 0x210   : > { %v1728_v62 = vpop.eup %1727  ;;  %v1214_v12 = vadd.f32 1.0, %v1726_v8 }
 0x211   : > { %1341 = vst [vmem:[%s2198_s10 + $0xe0] sm:$0xff] %v1728_v62  ;;  %1729 = vpow2.f32 %v1117_v4 }
 0x212   : > { %1731 = vrcp.f32 %v1214_v12  ;;  %v2420_v59 = vpop.f32.mrf.mxu3 }
 0x215   : > { %941 = vmatmul.f32.gmra.mxu2 %v747_v14  ;;  %v671_v14 = vadd.f32 %v2352_v36, %v2391_v15 }
 0x217   : > { %v1730_v63 = vpop.eup %1729 }
 0x218   : > { %v1732_v17 = vpop.eup %1731  ;;  %v1215_v18 = vadd.f32 1.0, %v1730_v63  ;;  %v894_v19 = vpop.f32.mrf.mxu2 }
 0x219   : > { %1342 = vst [vmem:[%s2198_s10 + $0xe8] sm:$0xff] %v1732_v17  ;;  %v895_v9 = vadd.f32 %v2177_v43, %v894_v19  ;;  %v754_v17 = vmax.f32 %v671_v14, 0.0 }
 0x21a   : > { %1733 = vrcp.f32 %v1215_v18  ;;  %v2426_v5 = vpop.f32.mrf.mxu3 }
 0x21b   : > { %v1024_v22 = vsub.f32 0.0, %v895_v9 }
 0x21d   : > { %v1119_v24 = vmul.f32 1.442695, %v1024_v22  ;;  %944 = vmatmul.f32.gmra.mxu2 %v748_v21 }
 0x21f   : > { %1735 = vpow2.f32 %v1119_v24  ;;  %v674_v24 = vadd.f32 %v2352_v36, %v2397_v27 }
 0x220   : > { %v1734_v11 = vpop.eup %1733  ;;  %v897_v25 = vpop.f32.mrf.mxu2 }
 0x221   : > { %1343 = vst [vmem:[%s2198_s10 + $0xf0] sm:$0xff] %v1734_v11  ;;  %v898_v43 = vadd.f32 %v2403_v28, %v897_v25  ;;  %v755_v25 = vmax.f32 %v674_v24, 0.0 }
 0x222   : > { %v2432_v63 = vpop.f32.mrf.mxu3 }
 0x223   : > { %v1025_v30 = vsub.f32 0.0, %v898_v43 }
 0x225   : > { %v1736_v20 = vpop.eup %1735  ;;  %v1121_v32 = vmul.f32 1.442695, %v1025_v30  ;;  %947 = vmatmul.f32.gmra.mxu2 %v749_v29 }
 0x226   : > { %v1216_v33 = vadd.f32 1.0, %v1736_v20 }
 0x227   : > { %1737 = vpow2.f32 %v1121_v32 }
 0x228   : > { %1739 = vrcp.f32 %v1216_v33  ;;  %v900_v37 = vpop.f32.mrf.mxu2  ;;  %v677_v33 = vadd.f32 %v2352_v36, %v2408_v38  ;;  %v680_v38 = vadd.f32 %v2352_v36, %v2414_v48  ;;  %v683_v48 = vadd.f32 %v2352_v36, %v2420_v59 }
 0x229   : > { %v901_v23 = vadd.f32 %v2403_v28, %v900_v37 }
 0x22a   : > { %v2438_v26 = vpop.f32.mrf.mxu3 }
 0x22b   : > { %v1026_v40 = vsub.f32 0.0, %v901_v23  ;;  %v692_v24 = vadd.f32 %v2352_v36, %v2438_v26 }
 0x22d   : > { %v1738_v41 = vpop.eup %1737  ;;  %v1123_v31 = vmul.f32 1.442695, %v1026_v40  ;;  %950 = vmatmul.f32.gmra.mxu2 %v750_v39  ;;  %v756_v39 = vmax.f32 %v677_v33, 0.0 }
 0x22e   : > { %v1740_v42 = vpop.eup %1739  ;;  %v1217_v45 = vadd.f32 1.0, %v1738_v41 }
 0x22f   : > { %1344 = vst [vmem:[%s2198_s10 + $0xf8] sm:$0xff] %v1740_v42  ;;  %1741 = vpow2.f32 %v1123_v31 }
 0x230   : > { %1743 = vrcp.f32 %v1217_v45  ;;  %v903_v46 = vpop.f32.mrf.mxu2 }
 0x231   : > { %v904_v50 = vadd.f32 %v2403_v28, %v903_v46 }
 0x232   : > { %v694_v34 = vpop.f32.mrf.mxu3 }
 0x233   : > { %v1027_v52 = vsub.f32 0.0, %v904_v50  ;;  %v695_v23 = vadd.f32 %v2352_v36, %v694_v34 }
 0x235   : > { %v1742_v53 = vpop.eup %1741  ;;  %v1125_v44 = vmul.f32 1.442695, %v1027_v52  ;;  %953 = vmatmul.f32.gmra.mxu2 %v751_v35  ;;  %v762_v41 = vmax.f32 %v695_v23, 0.0 }
 0x236   : > { %v1744_v54 = vpop.eup %1743  ;;  %v1218_v55 = vadd.f32 1.0, %v1742_v53  ;;  %v757_v53 = vmax.f32 %v680_v38, 0.0 }
 0x237   : > { %1345 = vst [vmem:[%s2198_s10 + $0x100] sm:$0xff] %v1744_v54  ;;  %1745 = vpow2.f32 %v1125_v44  ;;  %986 = vmatmul.f32.vlgmr.msrb.gmra.mxu3 %v762_v41 }
 0x238   : > { %1747 = vrcp.f32 %v1218_v55  ;;  %v906_v57 = vpop.f32.mrf.mxu2 }
 0x239   : > { %v907_v60 = vadd.f32 %v2403_v28, %v906_v57 }
 0x23a   : > { %v697_v50 = vpop.f32.mrf.mxu3 }
 0x23b   : > { %v1028_v49 = vsub.f32 0.0, %v907_v60  ;;  %v698_v52 = vadd.f32 %v2352_v36, %v697_v50 }
 0x23d   : > { %v1746_v0 = vpop.eup %1745  ;;  %v1127_v56 = vmul.f32 1.442695, %v1028_v49  ;;  %956 = vmatmul.f32.gmra.mxu2 %v752_v61  ;;  %v763_v54 = vmax.f32 %v698_v52, 0.0 }
 0x23e   : > { %v1748_v1 = vpop.eup %1747  ;;  %v1219_v2 = vadd.f32 1.0, %v1746_v0  ;;  %v758_v0 = vmax.f32 %v683_v48, 0.0 }
 0x23f   : > { %1346 = vst [vmem:[%s2198_s10 + $0x108] sm:$0xff] %v1748_v1  ;;  %1749 = vpow2.f32 %v1127_v56  ;;  %989 = vmatmul.f32.gmra.mxu3 %v763_v54 }
 0x240   : > { %1751 = vrcp.f32 %v1219_v2  ;;  %v909_v3 = vpop.f32.mrf.mxu2 }
 0x241   : > { %v910_v6 = vadd.f32 %v2403_v28, %v909_v3 }
 0x243   : > { %v1029_v8 = vsub.f32 0.0, %v910_v6  ;;  %v686_v6 = vadd.f32 %v2352_v36, %v2426_v5 }
 0x245   : > { %v1750_v10 = vpop.eup %1749  ;;  %v1129_v4 = vmul.f32 1.442695, %v1029_v8  ;;  %959 = vmatmul.f32.gmra.mxu2 %v753_v7  ;;  %v759_v8 = vmax.f32 %v686_v6, 0.0 }
 0x246   : > { %v1752_v62 = vpop.eup %1751  ;;  %v1220_v12 = vadd.f32 1.0, %v1750_v10 }
 0x247   : > { %1347 = vst [vmem:[%s2198_s10 + $0x110] sm:$0xff] %v1752_v62  ;;  %1753 = vpow2.f32 %v1129_v4 }
 0x248   : > { %1755 = vrcp.f32 %v1220_v12  ;;  %v912_v13 = vpop.f32.mrf.mxu2 }
 0x249   : > { %v913_v16 = vadd.f32 %v2403_v28, %v912_v13  ;;  %v689_v13 = vadd.f32 %v2352_v36, %v2432_v63 }
 0x24b   : > { %v1030_v18 = vsub.f32 0.0, %v913_v16 }
 0x24d   : > { %v1754_v19 = vpop.eup %1753  ;;  %v1131_v9 = vmul.f32 1.442695, %v1030_v18  ;;  %962 = vmatmul.f32.gmra.mxu2 %v754_v17  ;;  %v760_v17 = vmax.f32 %v689_v13, 0.0 }
 0x24e   : > { %v1756_v21 = vpop.eup %1755  ;;  %v1221_v22 = vadd.f32 1.0, %v1754_v19 }
 0x24f   : > { %1348 = vst [vmem:[%s2198_s10 + $0x118] sm:$0xff] %v1756_v21  ;;  %1757 = vpow2.f32 %v1131_v9 }
 0x250   : > { %1759 = vrcp.f32 %v1221_v22  ;;  %v915_v15 = vpop.f32.mrf.mxu2 }
 0x251   : > { %v916_v11 = vadd.f32 %v2403_v28, %v915_v15 }
 0x253   : > { %v1031_v43 = vsub.f32 0.0, %v916_v11  ;;  %v761_v11 = vmax.f32 %v692_v24, 0.0 }
 0x255   : > { %v1758_v29 = vpop.eup %1757  ;;  %v1133_v30 = vmul.f32 1.442695, %v1031_v43  ;;  %965 = vmatmul.f32.gmra.mxu2 %v755_v25 }
 0x256   : > { %v1760_v20 = vpop.eup %1759  ;;  %v1222_v32 = vadd.f32 1.0, %v1758_v29 }
 0x257   : > { %1349 = vst [vmem:[%s2198_s10 + $0x120] sm:$0xff] %v1760_v20  ;;  %1761 = vpow2.f32 %v1133_v30 }
 0x258   : > { %1763 = vrcp.f32 %v1222_v32  ;;  %v918_v27 = vpop.f32.mrf.mxu2 }
 0x259   : > { %v919_v37 = vadd.f32 %v2403_v28, %v918_v27 }
 0x25b   : > { %v1032_v40 = vsub.f32 0.0, %v919_v37 }
 0x25d   : > { %v1762_v31 = vpop.eup %1761  ;;  %v1135_v42 = vmul.f32 1.442695, %v1032_v40  ;;  %968 = vmatmul.f32.gmra.mxu2 %v756_v39 }
 0x25e   : > { %v1764_v45 = vpop.eup %1763  ;;  %v1223_v47 = vadd.f32 1.0, %v1762_v31 }
 0x25f   : > { %1350 = vst [vmem:[%s2198_s10 + $0x128] sm:$0xff] %v1764_v45  ;;  %1765 = vpow2.f32 %v1135_v42 }
 0x260   : > { %1767 = vrcp.f32 %v1223_v47  ;;  %v921_v46 = vpop.f32.mrf.mxu2 }
 0x261   : > { %v922_v35 = vadd.f32 %v2403_v28, %v921_v46 }
 0x263   : > { %v1033_v44 = vsub.f32 0.0, %v922_v35 }
 0x265   : > { %v1766_v55 = vpop.eup %1765  ;;  %v1137_v58 = vmul.f32 1.442695, %v1033_v44  ;;  %971 = vmatmul.f32.gmra.mxu2 %v757_v53 }
 0x266   : > { %v1768_v57 = vpop.eup %1767  ;;  %v1224_v60 = vadd.f32 1.0, %v1766_v55 }
 0x267   : > { %1351 = vst [vmem:[%s2198_s10 + $0x130] sm:$0xff] %v1768_v57  ;;  %1769 = vpow2.f32 %v1137_v58 }
 0x268   : > { %1771 = vrcp.f32 %v1224_v60  ;;  %v924_v61 = vpop.f32.mrf.mxu2 }
 0x269   : > { %v925_v49 = vadd.f32 %v2403_v28, %v924_v61 }
 0x26b   : > { %v1034_v56 = vsub.f32 0.0, %v925_v49 }
 0x26d   : > { %v1770_v1 = vpop.eup %1769  ;;  %v1139_v2 = vmul.f32 1.442695, %v1034_v56  ;;  %974 = vmatmul.f32.gmra.mxu2 %v758_v0 }
 0x26e   : > { %v1772_v51 = vpop.eup %1771  ;;  %v1225_v3 = vadd.f32 1.0, %v1770_v1 }
 0x26f   : > { %1352 = vst [vmem:[%s2198_s10 + $0x138] sm:$0xff] %v1772_v51  ;;  %1773 = vpow2.f32 %v1139_v2 }
 0x270   : > { %1775 = vrcp.f32 %v1225_v3  ;;  %v927_v59 = vpop.f32.mrf.mxu2 }
 0x271   : > { %v928_v7 = vadd.f32 %v2403_v28, %v927_v59 }
 0x273   : > { %v1035_v10 = vsub.f32 0.0, %v928_v7 }
 0x275   : > { %v1774_v4 = vpop.eup %1773  ;;  %v1141_v62 = vmul.f32 1.442695, %v1035_v10  ;;  %977 = vmatmul.f32.gmra.mxu2 %v759_v8 }
 0x276   : > { %v1776_v12 = vpop.eup %1775  ;;  %v1226_v14 = vadd.f32 1.0, %v1774_v4 }
 0x277   : > { %1353 = vst [vmem:[%s2198_s10 + $0x140] sm:$0xff] %v1776_v12  ;;  %1777 = vpow2.f32 %v1141_v62 }
 0x278   : > { %1779 = vrcp.f32 %v1226_v14  ;;  %v930_v5 = vpop.f32.mrf.mxu2 }
 0x279   : > { %v931_v16 = vadd.f32 %v2403_v28, %v930_v5 }
 0x27b   : > { %v1036_v18 = vsub.f32 0.0, %v931_v16 }
 0x27d   : > { %v1778_v19 = vpop.eup %1777  ;;  %v1143_v9 = vmul.f32 1.442695, %v1036_v18  ;;  %980 = vmatmul.f32.gmra.mxu2 %v760_v17 }
 0x27e   : > { %v1780_v21 = vpop.eup %1779  ;;  %v1227_v22 = vadd.f32 1.0, %v1778_v19 }
 0x27f   : > { %1354 = vst [vmem:[%s2198_s10 + $0x148] sm:$0xff] %v1780_v21  ;;  %1781 = vpow2.f32 %v1143_v9 }
 0x280   : > { %1783 = vrcp.f32 %v1227_v22  ;;  %v933_v63 = vpop.f32.mrf.mxu2 }
 0x281   : > { %v934_v15 = vadd.f32 %v2403_v28, %v933_v63 }
 0x283   : > { %v1037_v25 = vsub.f32 0.0, %v934_v15 }
 0x285   : > { %v1782_v43 = vpop.eup %1781  ;;  %v1145_v29 = vmul.f32 1.442695, %v1037_v25  ;;  %983 = vmatmul.f32.gmra.mxu2 %v761_v11 }
 0x286   : > { %v1784_v30 = vpop.eup %1783  ;;  %v1228_v20 = vadd.f32 1.0, %v1782_v43 }
 0x287   : > { %1355 = vst [vmem:[%s2198_s10 + $0x150] sm:$0xff] %v1784_v30  ;;  %1785 = vpow2.f32 %v1145_v29 }
 0x288   : > { %1787 = vrcp.f32 %v1228_v20  ;;  %v936_v32 = vpop.f32.mrf.mxu2 }
 0x289   : > { %v937_v33 = vadd.f32 %v2403_v28, %v936_v32 }
 0x28b   : > { %v1038_v36 = vsub.f32 0.0, %v937_v33 }
 0x28d   : > { %v1786_v26 = vpop.eup %1785  ;;  %v1147_v27 = vmul.f32 1.442695, %v1038_v36 }
 0x28e   : > { %v1788_v34 = vpop.eup %1787  ;;  %v1229_v37 = vadd.f32 1.0, %v1786_v26 }
 0x28f   : > { %1356 = vst [vmem:[%s2198_s10 + $0x158] sm:$0xff] %v1788_v34  ;;  %1789 = vpow2.f32 %v1147_v27 }
 0x290   : > { %1791 = vrcp.f32 %v1229_v37  ;;  %v939_v23 = vpop.f32.mrf.mxu2 }
 0x291   : > { %v940_v39 = vadd.f32 %v2403_v28, %v939_v23 }
 0x293   : > { %v1039_v40 = vsub.f32 0.0, %v940_v39 }
 0x295   : > { %v1790_v41 = vpop.eup %1789  ;;  %v1149_v31 = vmul.f32 1.442695, %v1039_v40 }
 0x296   : > { %v1792_v42 = vpop.eup %1791  ;;  %v1230_v45 = vadd.f32 1.0, %v1790_v41 }
 0x297   : > { %1357 = vst [vmem:[%s2198_s10 + $0x160] sm:$0xff] %v1792_v42  ;;  %1793 = vpow2.f32 %v1149_v31 }
 0x298   : > { %1795 = vrcp.f32 %v1230_v45  ;;  %v942_v47 = vpop.f32.mrf.mxu2 }
 0x299   : > { %v943_v38 = vadd.f32 %v2403_v28, %v942_v47 }
 0x29b   : > { %v1040_v46 = vsub.f32 0.0, %v943_v38 }
 0x29d   : > { %v1794_v50 = vpop.eup %1793  ;;  %v1151_v35 = vmul.f32 1.442695, %v1040_v46 }
 0x29e   : > { %v1796_v52 = vpop.eup %1795  ;;  %v1231_v53 = vadd.f32 1.0, %v1794_v50 }
 0x29f   : > { %1358 = vst [vmem:[%s2198_s10 + $0x168] sm:$0xff] %v1796_v52  ;;  %1797 = vpow2.f32 %v1151_v35 }
 0x2a0   : > { %1799 = vrcp.f32 %v1231_v53  ;;  %v945_v44 = vpop.f32.mrf.mxu2 }
 0x2a1   : > { %v946_v54 = vadd.f32 %v2403_v28, %v945_v44 }
 0x2a3   : > { %v1041_v55 = vsub.f32 0.0, %v946_v54 }
 0x2a5   : > { %v1798_v58 = vpop.eup %1797  ;;  %v1153_v57 = vmul.f32 1.442695, %v1041_v55 }
 0x2a6   : > { %v1800_v60 = vpop.eup %1799  ;;  %v1232_v48 = vadd.f32 1.0, %v1798_v58 }
 0x2a7   : > { %1359 = vst [vmem:[%s2198_s10 + $0x170] sm:$0xff] %v1800_v60  ;;  %1801 = vpow2.f32 %v1153_v57 }
 0x2a8   : > { %1803 = vrcp.f32 %v1232_v48  ;;  %v948_v61 = vpop.f32.mrf.mxu2 }
 0x2a9   : > { %v949_v49 = vadd.f32 %v2403_v28, %v948_v61 }
 0x2ab   : > { %v1042_v0 = vsub.f32 0.0, %v949_v49 }
 0x2ad   : > { %v1802_v56 = vpop.eup %1801  ;;  %v1155_v1 = vmul.f32 1.442695, %v1042_v0 }
 0x2ae   : > { %v1804_v2 = vpop.eup %1803  ;;  %v1233_v51 = vadd.f32 1.0, %v1802_v56 }
 0x2af   : > { %1360 = vst [vmem:[%s2198_s10 + $0x178] sm:$0xff] %v1804_v2  ;;  %1805 = vpow2.f32 %v1155_v1 }
 0x2b0   : > { %1807 = vrcp.f32 %v1233_v51  ;;  %v951_v3 = vpop.f32.mrf.mxu2 }
 0x2b1   : > { %v952_v6 = vadd.f32 %v2403_v28, %v951_v3 }
 0x2b3   : > { %v1043_v59 = vsub.f32 0.0, %v952_v6 }
 0x2b5   : > { %v1806_v7 = vpop.eup %1805  ;;  %v1157_v8 = vmul.f32 1.442695, %v1043_v59 }
 0x2b6   : > { %v1808_v10 = vpop.eup %1807  ;;  %v1234_v4 = vadd.f32 1.0, %v1806_v7 }
 0x2b7   : > { %1361 = vst [vmem:[%s2198_s10 + $0x180] sm:$0xff] %v1808_v10  ;;  %1809 = vpow2.f32 %v1157_v8 }
 0x2b8   : > { %1811 = vrcp.f32 %v1234_v4  ;;  %v954_v62 = vpop.f32.mrf.mxu2 }
 0x2b9   : > { %v955_v12 = vadd.f32 %v2403_v28, %v954_v62 }
 0x2ba   : > { %v987_v38 = vpop.f32.mrf.mxu3 }
 0x2bb   : > { %v1044_v14 = vsub.f32 0.0, %v955_v12  ;;  %v988_v50 = vadd.f32 %v2403_v28, %v987_v38 }
 0x2bd   : > { %v1810_v13 = vpop.eup %1809  ;;  %v1159_v5 = vmul.f32 1.442695, %v1044_v14  ;;  %v1055_v52 = vsub.f32 0.0, %v988_v50 }
 0x2be   : > { %v1812_v16 = vpop.eup %1811  ;;  %v1235_v17 = vadd.f32 1.0, %v1810_v13 }
 0x2bf   : > { %1362 = vst [vmem:[%s2198_s10 + $0x188] sm:$0xff] %v1812_v16  ;;  %1813 = vpow2.f32 %v1159_v5  ;;  %v1181_v54 = vmul.f32 1.442695, %v1055_v52 }
 0x2c0   : > { %1815 = vrcp.f32 %v1235_v17  ;;  %v957_v18 = vpop.f32.mrf.mxu2 }
 0x2c1   : > { %v958_v19 = vadd.f32 %v2403_v28, %v957_v18 }
 0x2c2   : > { %v990_v60 = vpop.f32.mrf.mxu3 }
 0x2c3   : > { %v1045_v9 = vsub.f32 0.0, %v958_v19  ;;  %v991_v61 = vadd.f32 %v2403_v28, %v990_v60 }
 0x2c5   : > { %v1814_v21 = vpop.eup %1813  ;;  %v1161_v22 = vmul.f32 1.442695, %v1045_v9  ;;  %v1056_v0 = vsub.f32 0.0, %v991_v61 }
 0x2c6   : > { %v1816_v24 = vpop.eup %1815  ;;  %v1236_v63 = vadd.f32 1.0, %v1814_v21 }
 0x2c7   : > { %1363 = vst [vmem:[%s2198_s10 + $0x190] sm:$0xff] %v1816_v24  ;;  %1817 = vpow2.f32 %v1161_v22  ;;  %v1183_v2 = vmul.f32 1.442695, %v1056_v0 }
 0x2c8   : > { %1819 = vrcp.f32 %v1236_v63  ;;  %v960_v15 = vpop.f32.mrf.mxu2 }
 0x2c9   : > { %v961_v11 = vadd.f32 %v2403_v28, %v960_v15 }
 0x2cb   : > { %v1046_v25 = vsub.f32 0.0, %v961_v11 }
 0x2cd   : > { %v1818_v43 = vpop.eup %1817  ;;  %v1163_v29 = vmul.f32 1.442695, %v1046_v25 }
 0x2ce   : > { %v1820_v30 = vpop.eup %1819  ;;  %v1237_v20 = vadd.f32 1.0, %v1818_v43 }
 0x2cf   : > { %1364 = vst [vmem:[%s2198_s10 + $0x198] sm:$0xff] %v1820_v30  ;;  %1821 = vpow2.f32 %v1163_v29 }
 0x2d0   : > { %1823 = vrcp.f32 %v1237_v20  ;;  %v963_v32 = vpop.f32.mrf.mxu2 }
 0x2d1   : > { %v964_v33 = vadd.f32 %v2403_v28, %v963_v32 }
 0x2d3   : > { %v1047_v36 = vsub.f32 0.0, %v964_v33 }
 0x2d5   : > { %v1822_v26 = vpop.eup %1821  ;;  %v1165_v27 = vmul.f32 1.442695, %v1047_v36 }
 0x2d6   : > { %v1824_v34 = vpop.eup %1823  ;;  %v1238_v37 = vadd.f32 1.0, %v1822_v26 }
 0x2d7   : > { %1365 = vst [vmem:[%s2198_s10 + $0x1a0] sm:$0xff] %v1824_v34  ;;  %1825 = vpow2.f32 %v1165_v27 }
 0x2d8   : > { %1827 = vrcp.f32 %v1238_v37  ;;  %v966_v23 = vpop.f32.mrf.mxu2 }
 0x2d9   : > { %v967_v39 = vadd.f32 %v2403_v28, %v966_v23 }
 0x2db   : > { %v1048_v40 = vsub.f32 0.0, %v967_v39 }
 0x2dd   : > { %v1826_v41 = vpop.eup %1825  ;;  %v1167_v31 = vmul.f32 1.442695, %v1048_v40 }
 0x2de   : > { %v1828_v42 = vpop.eup %1827  ;;  %v1239_v45 = vadd.f32 1.0, %v1826_v41 }
 0x2df   : > { %1366 = vst [vmem:[%s2198_s10 + $0x1a8] sm:$0xff] %v1828_v42  ;;  %1829 = vpow2.f32 %v1167_v31 }
 0x2e0   : > { %1831 = vrcp.f32 %v1239_v45  ;;  %v969_v47 = vpop.f32.mrf.mxu2 }
 0x2e1   : > { %v970_v46 = vadd.f32 %v2403_v28, %v969_v47 }
 0x2e3   : > { %v1049_v35 = vsub.f32 0.0, %v970_v46 }
 0x2e5   : > { %v1830_v53 = vpop.eup %1829  ;;  %v1169_v44 = vmul.f32 1.442695, %v1049_v35 }
 0x2e6   : > { %v1832_v55 = vpop.eup %1831  ;;  %v1240_v58 = vadd.f32 1.0, %v1830_v53 }
 0x2e7   : > { %1367 = vst [vmem:[%s2198_s10 + $0x1b0] sm:$0xff] %v1832_v55  ;;  %1833 = vpow2.f32 %v1169_v44 }
 0x2e8   : > { %1835 = vrcp.f32 %v1240_v58  ;;  %v972_v57 = vpop.f32.mrf.mxu2 }
 0x2e9   : > { %v973_v48 = vadd.f32 %v2403_v28, %v972_v57  ;;  %1837 = vpow2.f32 %v1181_v54 }
 0x2eb   : > { %v1050_v49 = vsub.f32 0.0, %v973_v48 }
 0x2ed   : > { %v1834_v56 = vpop.eup %1833  ;;  %v1171_v1 = vmul.f32 1.442695, %v1050_v49 }
 0x2ee   : > { %v1836_v51 = vpop.eup %1835  ;;  %v1241_v3 = vadd.f32 1.0, %v1834_v56 }
 0x2ef   : > { %v1838_v6 = vpop.eup %1837  ;;  %1368 = vst [vmem:[%s2198_s10 + $0x1b8] sm:$0xff] %v1836_v51  ;;  %1839 = vpow2.f32 %v1171_v1 }
 0x2f0   : > { %1841 = vrcp.f32 %v1241_v3  ;;  %v975_v59 = vpop.f32.mrf.mxu2  ;;  %v1247_v7 = vadd.f32 1.0, %v1838_v6 }
 0x2f1   : > { %v976_v8 = vadd.f32 %v2403_v28, %v975_v59  ;;  %1843 = vpow2.f32 %v1183_v2 }
 0x2f2   : > { %1845 = vrcp.f32 %v1247_v7 }
 0x2f3   : > { %v1051_v10 = vsub.f32 0.0, %v976_v8 }
 0x2f5   : > { %v1840_v4 = vpop.eup %1839  ;;  %v1173_v62 = vmul.f32 1.442695, %v1051_v10 }
 0x2f6   : > { %v1842_v12 = vpop.eup %1841  ;;  %v1242_v14 = vadd.f32 1.0, %v1840_v4 }
 0x2f7   : > { %v1844_v13 = vpop.eup %1843  ;;  %1369 = vst [vmem:[%s2198_s10 + $0x1c0] sm:$0xff] %v1842_v12  ;;  %1847 = vpow2.f32 %v1173_v62 }
 0x2f8   : > { %v1846_v5 = vpop.eup %1845  ;;  %1849 = vrcp.f32 %v1242_v14  ;;  %v978_v16 = vpop.f32.mrf.mxu2  ;;  %v1248_v17 = vadd.f32 1.0, %v1844_v13 }
 0x2f9   : > { %v979_v18 = vadd.f32 %v2403_v28, %v978_v16  ;;  %1375 = vst [vmem:[%s2198_s10 + $0x1f0] sm:$0xff] %v1846_v5 }
 0x2fa   : > { %1851 = vrcp.f32 %v1248_v17 }
 0x2fb   : > { %v1052_v19 = vsub.f32 0.0, %v979_v18 }
 0x2fd   : > { %v1848_v9 = vpop.eup %1847  ;;  %v1175_v21 = vmul.f32 1.442695, %v1052_v19 }
 0x2fe   : > { %v1850_v22 = vpop.eup %1849  ;;  %v1243_v24 = vadd.f32 1.0, %v1848_v9 }
 0x2ff   : > { %1370 = vst [vmem:[%s2198_s10 + $0x1c8] sm:$0xff] %v1850_v22  ;;  %1853 = vpow2.f32 %v1175_v21 }
 0x300   : > { %v1852_v63 = vpop.eup %1851  ;;  %1855 = vrcp.f32 %v1243_v24  ;;  %v981_v15 = vpop.f32.mrf.mxu2 }
 0x301   : > { %v982_v11 = vadd.f32 %v2403_v28, %v981_v15  ;;  %1376 = vst [vmem:[%s2198_s10 + $0x1f8] sm:$0xff] %v1852_v63 }
 0x303   : > { %v1053_v25 = vsub.f32 0.0, %v982_v11 }
 0x305   : > { %v1854_v43 = vpop.eup %1853  ;;  %v1177_v29 = vmul.f32 1.442695, %v1053_v25 }
 0x306   : > { %v1856_v30 = vpop.eup %1855  ;;  %v1244_v20 = vadd.f32 1.0, %v1854_v43 }
 0x307   : > { %1371 = vst [vmem:[%s2198_s10 + $0x1d0] sm:$0xff] %v1856_v30  ;;  %1857 = vpow2.f32 %v1177_v29 }
 0x308   : > { %1859 = vrcp.f32 %v1244_v20  ;;  %v984_v32 = vpop.f32.mrf.mxu2 }
 0x309   : > { %v985_v33 = vadd.f32 %v2403_v28, %v984_v32 }
 0x30b   : > { %v1054_v36 = vsub.f32 0.0, %v985_v33 }
 0x30d   : > { %v1858_v26 = vpop.eup %1857  ;;  %v1179_v27 = vmul.f32 1.442695, %v1054_v36 }
 0x30e   : > { %v1860_v34 = vpop.eup %1859  ;;  %v1245_v37 = vadd.f32 1.0, %v1858_v26 }
 0x30f   : > { %1372 = vst [vmem:[%s2198_s10 + $0x1d8] sm:$0xff] %v1860_v34  ;;  %1861 = vpow2.f32 %v1179_v27 }
 0x310   : > { %1863 = vrcp.f32 %v1245_v37 }
 0x315   : > { %v1862_v23 = vpop.eup %1861 }
 0x316   : > { %v1864_v39 = vpop.eup %1863  ;;  %v1246_v40 = vadd.f32 1.0, %v1862_v23 }
 0x317   : > { %1373 = vst [vmem:[%s2198_s10 + $0x1e0] sm:$0xff] %v1864_v39 }
 0x318   : > { %1865 = vrcp.f32 %v1246_v40 }
 0x31e   : > { %v1866_v28 = vpop.eup %1865 }
 0x31f   : > { %1374 = vst [vmem:[%s2198_s10 + $0x1e8] sm:$0xff] %v1866_v28 }
 0x320   : > { %1896 = shalt.err (!%p1893_p3)
}
 0x321   : > { %s1933_s8 = smov 128   ;;  %s1934_s10 = smov 8  }
 0x322   : > { %1568 = dma.vmem_to_hbm [thread:$0]  (%p2003_p5), %s1391_s25, 8192, %s1393_s26, %s1378_s30, %s1933_s8, %s1933_s8, %s1934_s10  }
 0x323 PF: > { %p1574_p4 = scmp.ge.s32.totalorder %s1931_s21, 2  ;;  %s1407_s13 = sand.u32 1, %s1919_s18  }
 0x324   : > { %s1408_s14 = scalar_lea.sflag [#allocation3], %s1407_s13 }
 0x325   : > { %p1571_p7 = pnand %p1574_p4, %p2007_p6 }
 0x327   : > { %p1572_p8 = pneg %p1571_p7 }
 0x329   : > { %1914 = dma.done.wait (%p1572_p8), %s1408_s14, 8192  }
 0x32a   : > { %1916 = vsyncadd (%p1572_p8), %s1408_s14, 4294959104  ;;  %p15_p9 = scmp.ge.s32.totalorder %s1990_s24, 4   ;;  %s2550_s18 = smov %s1923_s19 }
 0x32b   : > { %s2551_s19 = smov %s1927_s20  ;;  %s2552_s20 = smov %s2001_s27 }
 0x32c   : > { %s2553_s21 = smov %s1990_s24  ;;  %17 = sbr.rel (!%p15_p9) target bundleno = 3 (0x3), region = 75 }
 0x331   :  { %1414 = vsyncpa [#allocation3], 1 }
 0x332   :  { %1416 = vsyncpa [#allocation3 + $0x1], 1 }

</bundles_post_ra>
